<compile_context>
chip_gen: v7x
topology: tpu7x:2x2x1
jax: 0.10.0
libtpu: 0.0.40
codegen_flags: <defaults>
</compile_context>

<pallas_src>
import math

import jax
import jax.numpy as jnp
from jax.experimental import pallas as pl
from jax.experimental.pallas import tpu as pltpu

# ---- model constants (match the PyTorch module) ----
D_Q = 64
D_V = 64
D_MODEL = 256
N_HEAD = 8
D_FF = 256
N_LAYERS = 6
D_FEATURE = 3
LN_EPS = 1e-5
NEG_INF = -1e9


def _layer_norm(y):
    # nn.LayerNorm(d_model) created fresh in forward -> gamma=1, beta=0, eps=1e-5,
    # biased variance.
    mu = jnp.mean(y, axis=-1, keepdims=True)
    var = jnp.mean((y - mu) ** 2, axis=-1, keepdims=True)
    return (y - mu) * jax.lax.rsqrt(var + LN_EPS)


# --------------------------------------------------------------------------
# Single fused kernel: pos2emb (layer 0 prologue) + one encoder layer per
# grid step along the layer axis. Activation is resident in the output block.
# --------------------------------------------------------------------------
def encoder_kernel(pos_ref, bias_ref, keep_ref, pw_ref, pb_ref,
                   wq_ref, wk_ref, wv_ref, wo_ref, w1_ref, w2_ref,
                   o_ref):
    layer = pl.program_id(1)
    S = pos_ref.shape[1]

    # ---- layer-0 prologue: position2embedding (Linear d_feature -> d_model) ----
    @pl.when(layer == 0)
    def _():
        p = pos_ref[0]                       # (S, d_feature) f32
        w = pw_ref[...]                      # (d_feature, d_model) f32
        b = pb_ref[...]                      # (1, d_model) f32
        emb = jnp.broadcast_to(b, (S, D_MODEL))
        # contracting dim is tiny (3) -> broadcast mul-adds on the VPU
        for f in range(D_FEATURE):
            emb = emb + p[:, f:f + 1] * w[f:f + 1, :]
        o_ref[0] = emb

    x = o_ref[0]                             # (S, d_model) f32, resident across layers
    bias = bias_ref[0]                       # (S, S) additive mask: -1e9 where linkM==0
    keep = keep_ref[0]                       # (S, S) multiplicative mask: 0 where linkM==0

    xb = x.astype(jnp.bfloat16)
    # fused, lane-dense projections (bf16 in, f32 accumulate)
    q_all = jnp.dot(xb, wq_ref[0], preferred_element_type=jnp.float32)   # (S, H*dq)
    k_all = jnp.dot(xb, wk_ref[0], preferred_element_type=jnp.float32)   # (S, H*dq)
    v_all = jnp.dot(xb, wv_ref[0], preferred_element_type=jnp.float32)   # (S, H*dv)

    scale = 1.0 / math.sqrt(D_Q)
    ctxs = []
    for h in range(N_HEAD):                  # tiny (S,S) per-head attention
        qh = q_all[:, h * D_Q:(h + 1) * D_Q]
        kh = k_all[:, h * D_Q:(h + 1) * D_Q]
        vh = v_all[:, h * D_V:(h + 1) * D_V]
        s = jnp.dot(qh, kh.T, preferred_element_type=jnp.float32) * scale + bias
        s = s - jnp.max(s, axis=-1, keepdims=True)
        e = jnp.exp(s)
        a = e * pl.reciprocal(jnp.sum(e, axis=-1, keepdims=True), approx=True)
        a = a * keep                          # attn.masked_fill_(attn_mask, 0)
        ctxs.append(jnp.dot(a, vh, preferred_element_type=jnp.float32))
    ctx_all = jnp.concatenate(ctxs, axis=-1)                              # (S, H*dv)

    attn_out = jnp.dot(ctx_all.astype(jnp.bfloat16), wo_ref[0],
                       preferred_element_type=jnp.float32)
    ln1 = _layer_norm(attn_out + x)                                       # residual + LN

    # ---- position-wise feed-forward ----
    h1 = jnp.maximum(jnp.dot(ln1.astype(jnp.bfloat16), w1_ref[0],
                             preferred_element_type=jnp.float32), 0.0)
    ff = jnp.dot(h1.astype(jnp.bfloat16), w2_ref[0],
                 preferred_element_type=jnp.float32)
    o_ref[0] = _layer_norm(ff + ln1)                                      # residual + LN


# --------------------------------------------------------------------------
# Wrapper: mask preprocessing, bf16 weight cast, single pallas_call
# --------------------------------------------------------------------------
@jax.jit
def encoder_forward(position, linkM, pos_w, pos_b, wq, wk, wv, wo, w1, w2):
    B, S, _ = position.shape
    masked = (linkM == 0)
    bias = jnp.where(masked, jnp.float32(NEG_INF), jnp.float32(0.0))
    keep = jnp.where(masked, jnp.float32(0.0), jnp.float32(1.0))

    wq = wq.astype(jnp.bfloat16)
    wk = wk.astype(jnp.bfloat16)
    wv = wv.astype(jnp.bfloat16)
    wo = wo.astype(jnp.bfloat16)
    w1 = w1.astype(jnp.bfloat16)
    w2 = w2.astype(jnp.bfloat16)

    hq = N_HEAD * D_Q
    hv = N_HEAD * D_V
    return pl.pallas_call(
        encoder_kernel,
        out_shape=jax.ShapeDtypeStruct((B, S, D_MODEL), jnp.float32),
        grid=(B, N_LAYERS),
        in_specs=[
            pl.BlockSpec((1, S, D_FEATURE), lambda b, l: (b, 0, 0)),   # position
            pl.BlockSpec((1, S, S), lambda b, l: (b, 0, 0)),           # additive mask
            pl.BlockSpec((1, S, S), lambda b, l: (b, 0, 0)),           # keep mask
            pl.BlockSpec((D_FEATURE, D_MODEL), lambda b, l: (0, 0)),   # pos2emb W
            pl.BlockSpec((1, D_MODEL), lambda b, l: (0, 0)),           # pos2emb b
            pl.BlockSpec((1, D_MODEL, hq), lambda b, l: (l, 0, 0)),    # Wq (per layer)
            pl.BlockSpec((1, D_MODEL, hq), lambda b, l: (l, 0, 0)),    # Wk
            pl.BlockSpec((1, D_MODEL, hv), lambda b, l: (l, 0, 0)),    # Wv
            pl.BlockSpec((1, hv, D_MODEL), lambda b, l: (l, 0, 0)),    # Wo (fc)
            pl.BlockSpec((1, D_MODEL, D_FF), lambda b, l: (l, 0, 0)),  # FFN W1
            pl.BlockSpec((1, D_FF, D_MODEL), lambda b, l: (l, 0, 0)),  # FFN W2
        ],
        out_specs=pl.BlockSpec((1, S, D_MODEL), lambda b, l: (b, 0, 0)),
        compiler_params=pltpu.CompilerParams(
            dimension_semantics=("parallel", "arbitrary")),
    )(position, bias, keep, pos_w, pos_b, wq, wk, wv, wo, w1, w2)


# --------------------------------------------------------------------------
# Pure-JAX f32 reference (mirrors the PyTorch forward) for a sanity check
# --------------------------------------------------------------------------
def encoder_reference(position, linkM, pos_w, pos_b, wq, wk, wv, wo, w1, w2):
    B, S, _ = position.shape
    x = position @ pos_w + pos_b
    masked = (linkM == 0)
    for l in range(N_LAYERS):
        q = (x @ wq[l]).reshape(B, S, N_HEAD, D_Q).transpose(0, 2, 1, 3)
        k = (x @ wk[l]).reshape(B, S, N_HEAD, D_Q).transpose(0, 2, 1, 3)
        v = (x @ wv[l]).reshape(B, S, N_HEAD, D_V).transpose(0, 2, 1, 3)
        s = jnp.einsum('bhqd,bhkd->bhqk', q, k) / math.sqrt(D_Q)
        s = jnp.where(masked[:, None], NEG_INF, s)
        a = jax.nn.softmax(s, axis=-1)
        a = jnp.where(masked[:, None], 0.0, a)
        ctx = jnp.einsum('bhqk,bhkd->bhqd', a, v)
        ctx = ctx.transpose(0, 2, 1, 3).reshape(B, S, N_HEAD * D_V)
        ln1 = _layer_norm(ctx @ wo[l] + x)
        ff = jnp.maximum(ln1 @ w1[l], 0.0) @ w2[l]
        x = _layer_norm(ff + ln1)
    return x


def init_params(key):
    ks = jax.random.split(key, 8)
    pos_w = jax.random.normal(ks[0], (D_FEATURE, D_MODEL), jnp.float32) * 0.1
    pos_b = jax.random.normal(ks[1], (1, D_MODEL), jnp.float32) * 0.1
    wq = jax.random.normal(ks[2], (N_LAYERS, D_MODEL, N_HEAD * D_Q), jnp.float32) * 0.05
    wk = jax.random.normal(ks[3], (N_LAYERS, D_MODEL, N_HEAD * D_Q), jnp.float32) * 0.05
    wv = jax.random.normal(ks[4], (N_LAYERS, D_MODEL, N_HEAD * D_V), jnp.float32) * 0.05
    wo = jax.random.normal(ks[5], (N_LAYERS, N_HEAD * D_V, D_MODEL), jnp.float32) * 0.05
    w1 = jax.random.normal(ks[6], (N_LAYERS, D_MODEL, D_FF), jnp.float32) * 0.05
    w2 = jax.random.normal(ks[7], (N_LAYERS, D_FF, D_MODEL), jnp.float32) * 0.05
    return pos_w, pos_b, wq, wk, wv, wo, w1, w2


if __name__ == "__main__":
    key = jax.random.PRNGKey(0)
    k_pos, k_link, k_param = jax.random.split(key, 3)

    B, S = 1, 8   # batch_size = 1 in the reference module; S = number of graph nodes
    position = jax.random.normal(k_pos, (B, S, D_FEATURE), jnp.float32)

    # random adjacency-like link matrix (0/1) with guaranteed self-links
    link = jax.random.bernoulli(k_link, 0.6, (B, S, S)).astype(jnp.float32)
    eye = jnp.broadcast_to(jnp.eye(S, dtype=jnp.float32), (B, S, S))
    linkM = jnp.maximum(link, eye)

    params = init_params(k_param)

    out = encoder_forward(position, linkM, *params)
    out = jax.block_until_ready(out)

    assert out.shape == (B, S, D_MODEL), out.shape
    assert bool(jnp.all(jnp.isfinite(out)))

    # loose sanity check vs f32 reference (kernel uses bf16 matmul inputs)
    ref = encoder_reference(position, linkM, *params)
    max_err = float(jnp.max(jnp.abs(out - ref)))
    assert max_err < 0.5, f"max abs error vs f32 reference too large: {max_err}"

    print("KERNEL_OK")
</pallas_src>

<mosaic_0001>
module attributes {stable_mosaic.version = 11 : i64} {
  func.func @encoder_kernel(%arg0: i32, %arg1: i32, %arg2: memref<1x8x3xf32, #tpu.memory_space<vmem>>, %arg3: memref<1x8x8xf32, #tpu.memory_space<vmem>>, %arg4: memref<1x8x8xf32, #tpu.memory_space<vmem>>, %arg5: memref<3x256xf32, #tpu.memory_space<vmem>>, %arg6: memref<1x256xf32, #tpu.memory_space<vmem>>, %arg7: memref<1x256x512xbf16, #tpu.memory_space<vmem>>, %arg8: memref<1x256x512xbf16, #tpu.memory_space<vmem>>, %arg9: memref<1x256x512xbf16, #tpu.memory_space<vmem>>, %arg10: memref<1x512x256xbf16, #tpu.memory_space<vmem>>, %arg11: memref<1x256x256xbf16, #tpu.memory_space<vmem>>, %arg12: memref<1x256x256xbf16, #tpu.memory_space<vmem>>, %arg13: memref<1x8x256xf32, #tpu.memory_space<vmem>>) attributes {dimension_semantics = [#tpu.dimension_semantics<parallel>, #tpu.dimension_semantics<arbitrary>], iteration_bounds = array<i64: 1, 6>, scalar_prefetch = 0 : i64, scratch_operands = 0 : i64, tpu.core_type = #tpu.core_type<tc>, window_params = [{transform_indices = @transform_0, window_bounds = array<i64: 1, 8, 3>}, {transform_indices = @transform_1, window_bounds = array<i64: 1, 8, 8>}, {transform_indices = @transform_2, window_bounds = array<i64: 1, 8, 8>}, {pipeline_mode = #tpu.pipeline_mode<synchronous>, transform_indices = @transform_3, window_bounds = array<i64: 3, 256>}, {pipeline_mode = #tpu.pipeline_mode<synchronous>, transform_indices = @transform_4, window_bounds = array<i64: 1, 256>}, {transform_indices = @transform_5, window_bounds = array<i64: 1, 256, 512>}, {transform_indices = @transform_6, window_bounds = array<i64: 1, 256, 512>}, {transform_indices = @transform_7, window_bounds = array<i64: 1, 256, 512>}, {transform_indices = @transform_8, window_bounds = array<i64: 1, 512, 256>}, {transform_indices = @transform_9, window_bounds = array<i64: 1, 256, 256>}, {transform_indices = @transform_10, window_bounds = array<i64: 1, 256, 256>}, {transform_indices = @transform_11, window_bounds = array<i64: 1, 8, 256>}]} {
    %c0_i32 = arith.constant 0 : i32
    %0 = arith.cmpi eq, %arg1, %c0_i32 : i32
    %1 = arith.extui %0 : i1 to i32
    %c0_i32_0 = arith.constant 0 : i32
    %2 = arith.cmpi ne, %1, %c0_i32_0 : i32
    scf.if %2 {
      %c0_86 = arith.constant 0 : index
      %c0_87 = arith.constant 0 : index
      %c0_88 = arith.constant 0 : index
      %235 = vector.load %arg2[%c0_86, %c0_87, %c0_88] : memref<1x8x3xf32, #tpu.memory_space<vmem>>, vector<1x8x3xf32>
      %236 = vector.shape_cast %235 : vector<1x8x3xf32> to vector<8x3xf32>
      %c0_89 = arith.constant 0 : index
      %c0_90 = arith.constant 0 : index
      %237 = vector.load %arg5[%c0_89, %c0_90] : memref<3x256xf32, #tpu.memory_space<vmem>>, vector<3x256xf32>
      %c0_91 = arith.constant 0 : index
      %c0_92 = arith.constant 0 : index
      %238 = vector.load %arg6[%c0_91, %c0_92] : memref<1x256xf32, #tpu.memory_space<vmem>>, vector<1x256xf32>
      %239 = vector.shape_cast %238 : vector<1x256xf32> to vector<1x256xf32>
      %240 = vector.broadcast %239 : vector<1x256xf32> to vector<8x256xf32>
      %241 = vector.extract_strided_slice %236 {offsets = [0, 0], sizes = [8, 1], strides = [1, 1]} : vector<8x3xf32> to vector<8x1xf32>
      %242 = vector.extract_strided_slice %237 {offsets = [0, 0], sizes = [1, 256], strides = [1, 1]} : vector<3x256xf32> to vector<1x256xf32>
      %243 = vector.broadcast %241 : vector<8x1xf32> to vector<8x256xf32>
      %244 = vector.broadcast %242 : vector<1x256xf32> to vector<8x256xf32>
      %245 = arith.mulf %243, %244 : vector<8x256xf32>
      %246 = arith.addf %240, %245 : vector<8x256xf32>
      %247 = vector.extract_strided_slice %236 {offsets = [0, 1], sizes = [8, 1], strides = [1, 1]} : vector<8x3xf32> to vector<8x1xf32>
      %248 = vector.extract_strided_slice %237 {offsets = [1, 0], sizes = [1, 256], strides = [1, 1]} : vector<3x256xf32> to vector<1x256xf32>
      %249 = vector.broadcast %247 : vector<8x1xf32> to vector<8x256xf32>
      %250 = vector.broadcast %248 : vector<1x256xf32> to vector<8x256xf32>
      %251 = arith.mulf %249, %250 : vector<8x256xf32>
      %252 = arith.addf %246, %251 : vector<8x256xf32>
      %253 = vector.extract_strided_slice %236 {offsets = [0, 2], sizes = [8, 1], strides = [1, 1]} : vector<8x3xf32> to vector<8x1xf32>
      %254 = vector.extract_strided_slice %237 {offsets = [2, 0], sizes = [1, 256], strides = [1, 1]} : vector<3x256xf32> to vector<1x256xf32>
      %255 = vector.broadcast %253 : vector<8x1xf32> to vector<8x256xf32>
      %256 = vector.broadcast %254 : vector<1x256xf32> to vector<8x256xf32>
      %257 = arith.mulf %255, %256 : vector<8x256xf32>
      %258 = arith.addf %252, %257 : vector<8x256xf32>
      %c0_93 = arith.constant 0 : index
      %c0_94 = arith.constant 0 : index
      %c0_95 = arith.constant 0 : index
      %259 = vector.load %arg13[%c0_93, %c0_94, %c0_95] : memref<1x8x256xf32, #tpu.memory_space<vmem>>, vector<1x8x256xf32>
      %260 = vector.shape_cast %259 : vector<1x8x256xf32> to vector<8x256xf32>
      %261 = vector.shape_cast %258 : vector<8x256xf32> to vector<1x8x256xf32>
      tpu.vector_store %arg13[%c0_93, %c0_94, %c0_95], %261 {strides = array<i32>} : memref<1x8x256xf32, #tpu.memory_space<vmem>>, vector<1x8x256xf32>,
    } else {
    }
    %c0 = arith.constant 0 : index
    %c0_1 = arith.constant 0 : index
    %c0_2 = arith.constant 0 : index
    %3 = vector.load %arg13[%c0, %c0_1, %c0_2] : memref<1x8x256xf32, #tpu.memory_space<vmem>>, vector<1x8x256xf32>
    %4 = vector.shape_cast %3 : vector<1x8x256xf32> to vector<8x256xf32>
    %c0_3 = arith.constant 0 : index
    %c0_4 = arith.constant 0 : index
    %c0_5 = arith.constant 0 : index
    %5 = vector.load %arg3[%c0_3, %c0_4, %c0_5] : memref<1x8x8xf32, #tpu.memory_space<vmem>>, vector<1x8x8xf32>
    %6 = vector.shape_cast %5 : vector<1x8x8xf32> to vector<8x8xf32>
    %c0_6 = arith.constant 0 : index
    %c0_7 = arith.constant 0 : index
    %c0_8 = arith.constant 0 : index
    %7 = vector.load %arg4[%c0_6, %c0_7, %c0_8] : memref<1x8x8xf32, #tpu.memory_space<vmem>>, vector<1x8x8xf32>
    %8 = vector.shape_cast %7 : vector<1x8x8xf32> to vector<8x8xf32>
    %9 = arith.truncf %4 : vector<8x256xf32> to vector<8x256xbf16>
    %c0_9 = arith.constant 0 : index
    %c0_10 = arith.constant 0 : index
    %c0_11 = arith.constant 0 : index
    %10 = vector.load %arg7[%c0_9, %c0_10, %c0_11] : memref<1x256x512xbf16, #tpu.memory_space<vmem>>, vector<1x256x512xbf16>
    %11 = vector.shape_cast %10 : vector<1x256x512xbf16> to vector<256x512xbf16>
    %cst = arith.constant dense<0.000000e+00> : vector<8x512xf32>
    %12 = tpu.matmul %9, %11, %cst {dimension_numbers = #tpu.dot_dimension_numbers<[1], [0], [0], [1], [0, 0, 1, 1], [], []>} : vector<8x256xbf16>, vector<256x512xbf16>, vector<8x512xf32> -> vector<8x512xf32>
    %c0_12 = arith.constant 0 : index
    %c0_13 = arith.constant 0 : index
    %c0_14 = arith.constant 0 : index
    %13 = vector.load %arg8[%c0_12, %c0_13, %c0_14] : memref<1x256x512xbf16, #tpu.memory_space<vmem>>, vector<1x256x512xbf16>
    %14 = vector.shape_cast %13 : vector<1x256x512xbf16> to vector<256x512xbf16>
    %cst_15 = arith.constant dense<0.000000e+00> : vector<8x512xf32>
    %15 = tpu.matmul %9, %14, %cst_15 {dimension_numbers = #tpu.dot_dimension_numbers<[1], [0], [0], [1], [0, 0, 1, 1], [], []>} : vector<8x256xbf16>, vector<256x512xbf16>, vector<8x512xf32> -> vector<8x512xf32>
    %c0_16 = arith.constant 0 : index
    %c0_17 = arith.constant 0 : index
    %c0_18 = arith.constant 0 : index
    %16 = vector.load %arg9[%c0_16, %c0_17, %c0_18] : memref<1x256x512xbf16, #tpu.memory_space<vmem>>, vector<1x256x512xbf16>
    %17 = vector.shape_cast %16 : vector<1x256x512xbf16> to vector<256x512xbf16>
    %cst_19 = arith.constant dense<0.000000e+00> : vector<8x512xf32>
    %18 = tpu.matmul %9, %17, %cst_19 {dimension_numbers = #tpu.dot_dimension_numbers<[1], [0], [0], [1], [0, 0, 1, 1], [], []>} : vector<8x256xbf16>, vector<256x512xbf16>, vector<8x512xf32> -> vector<8x512xf32>
    %19 = vector.extract_strided_slice %12 {offsets = [0, 0], sizes = [8, 64], strides = [1, 1]} : vector<8x512xf32> to vector<8x64xf32>
    %20 = vector.extract_strided_slice %15 {offsets = [0, 0], sizes = [8, 64], strides = [1, 1]} : vector<8x512xf32> to vector<8x64xf32>
    %21 = vector.extract_strided_slice %18 {offsets = [0, 0], sizes = [8, 64], strides = [1, 1]} : vector<8x512xf32> to vector<8x64xf32>
    %22 = tpu.transpose %20, [1, 0] : vector<8x64xf32> -> vector<64x8xf32>
    %cst_20 = arith.constant dense<0.000000e+00> : vector<8x8xf32>
    %23 = tpu.matmul %19, %22, %cst_20 {dimension_numbers = #tpu.dot_dimension_numbers<[1], [0], [0], [1], [0, 0, 1, 1], [], []>} : vector<8x64xf32>, vector<64x8xf32>, vector<8x8xf32> -> vector<8x8xf32>
    %cst_21 = arith.constant 1.250000e-01 : f32
    %24 = vector.broadcast %cst_21 : f32 to vector<8x8xf32>
    %25 = arith.mulf %23, %24 : vector<8x8xf32>
    %26 = arith.addf %25, %6 : vector<8x8xf32>
    %cst_22 = arith.constant dense<0xFF800000> : vector<8xf32>
    %27 = vector.multi_reduction <maximumf>, %26, %cst_22 [1] : vector<8x8xf32> to vector<8xf32>
    %28 = vector.shape_cast %27 : vector<8xf32> to vector<8x1xf32>
    %29 = vector.broadcast %28 : vector<8x1xf32> to vector<8x8xf32>
    %30 = arith.subf %26, %29 : vector<8x8xf32>
    %31 = math.exp %30 : vector<8x8xf32>
    %cst_23 = arith.constant dense<0.000000e+00> : vector<8xf32>
    %32 = vector.multi_reduction <add>, %31, %cst_23 [1] : vector<8x8xf32> to vector<8xf32>
    %33 = vector.shape_cast %32 : vector<8xf32> to vector<8x1xf32>
    %34 = tpu.reciprocal %33 {approx = true} : vector<8x1xf32> -> vector<8x1xf32>
    %35 = vector.broadcast %34 : vector<8x1xf32> to vector<8x8xf32>
    %36 = arith.mulf %31, %35 : vector<8x8xf32>
    %37 = arith.mulf %36, %8 : vector<8x8xf32>
    %cst_24 = arith.constant dense<0.000000e+00> : vector<8x64xf32>
    %38 = tpu.matmul %37, %21, %cst_24 {dimension_numbers = #tpu.dot_dimension_numbers<[1], [0], [0], [1], [0, 0, 1, 1], [], []>} : vector<8x8xf32>, vector<8x64xf32>, vector<8x64xf32> -> vector<8x64xf32>
    %39 = vector.extract_strided_slice %12 {offsets = [0, 64], sizes = [8, 64], strides = [1, 1]} : vector<8x512xf32> to vector<8x64xf32>
    %40 = vector.extract_strided_slice %15 {offsets = [0, 64], sizes = [8, 64], strides = [1, 1]} : vector<8x512xf32> to vector<8x64xf32>
    %41 = vector.extract_strided_slice %18 {offsets = [0, 64], sizes = [8, 64], strides = [1, 1]} : vector<8x512xf32> to vector<8x64xf32>
    %42 = tpu.transpose %40, [1, 0] : vector<8x64xf32> -> vector<64x8xf32>
    %cst_25 = arith.constant dense<0.000000e+00> : vector<8x8xf32>
    %43 = tpu.matmul %39, %42, %cst_25 {dimension_numbers = #tpu.dot_dimension_numbers<[1], [0], [0], [1], [0, 0, 1, 1], [], []>} : vector<8x64xf32>, vector<64x8xf32>, vector<8x8xf32> -> vector<8x8xf32>
    %cst_26 = arith.constant 1.250000e-01 : f32
    %44 = vector.broadcast %cst_26 : f32 to vector<8x8xf32>
    %45 = arith.mulf %43, %44 : vector<8x8xf32>
    %46 = arith.addf %45, %6 : vector<8x8xf32>
    %cst_27 = arith.constant dense<0xFF800000> : vector<8xf32>
    %47 = vector.multi_reduction <maximumf>, %46, %cst_27 [1] : vector<8x8xf32> to vector<8xf32>
    %48 = vector.shape_cast %47 : vector<8xf32> to vector<8x1xf32>
    %49 = vector.broadcast %48 : vector<8x1xf32> to vector<8x8xf32>
    %50 = arith.subf %46, %49 : vector<8x8xf32>
    %51 = math.exp %50 : vector<8x8xf32>
    %cst_28 = arith.constant dense<0.000000e+00> : vector<8xf32>
    %52 = vector.multi_reduction <add>, %51, %cst_28 [1] : vector<8x8xf32> to vector<8xf32>
    %53 = vector.shape_cast %52 : vector<8xf32> to vector<8x1xf32>
    %54 = tpu.reciprocal %53 {approx = true} : vector<8x1xf32> -> vector<8x1xf32>
    %55 = vector.broadcast %54 : vector<8x1xf32> to vector<8x8xf32>
    %56 = arith.mulf %51, %55 : vector<8x8xf32>
    %57 = arith.mulf %56, %8 : vector<8x8xf32>
    %cst_29 = arith.constant dense<0.000000e+00> : vector<8x64xf32>
    %58 = tpu.matmul %57, %41, %cst_29 {dimension_numbers = #tpu.dot_dimension_numbers<[1], [0], [0], [1], [0, 0, 1, 1], [], []>} : vector<8x8xf32>, vector<8x64xf32>, vector<8x64xf32> -> vector<8x64xf32>
    %59 = vector.extract_strided_slice %12 {offsets = [0, 128], sizes = [8, 64], strides = [1, 1]} : vector<8x512xf32> to vector<8x64xf32>
    %60 = vector.extract_strided_slice %15 {offsets = [0, 128], sizes = [8, 64], strides = [1, 1]} : vector<8x512xf32> to vector<8x64xf32>
    %61 = vector.extract_strided_slice %18 {offsets = [0, 128], sizes = [8, 64], strides = [1, 1]} : vector<8x512xf32> to vector<8x64xf32>
    %62 = tpu.transpose %60, [1, 0] : vector<8x64xf32> -> vector<64x8xf32>
    %cst_30 = arith.constant dense<0.000000e+00> : vector<8x8xf32>
    %63 = tpu.matmul %59, %62, %cst_30 {dimension_numbers = #tpu.dot_dimension_numbers<[1], [0], [0], [1], [0, 0, 1, 1], [], []>} : vector<8x64xf32>, vector<64x8xf32>, vector<8x8xf32> -> vector<8x8xf32>
    %cst_31 = arith.constant 1.250000e-01 : f32
    %64 = vector.broadcast %cst_31 : f32 to vector<8x8xf32>
    %65 = arith.mulf %63, %64 : vector<8x8xf32>
    %66 = arith.addf %65, %6 : vector<8x8xf32>
    %cst_32 = arith.constant dense<0xFF800000> : vector<8xf32>
    %67 = vector.multi_reduction <maximumf>, %66, %cst_32 [1] : vector<8x8xf32> to vector<8xf32>
    %68 = vector.shape_cast %67 : vector<8xf32> to vector<8x1xf32>
    %69 = vector.broadcast %68 : vector<8x1xf32> to vector<8x8xf32>
    %70 = arith.subf %66, %69 : vector<8x8xf32>
    %71 = math.exp %70 : vector<8x8xf32>
    %cst_33 = arith.constant dense<0.000000e+00> : vector<8xf32>
    %72 = vector.multi_reduction <add>, %71, %cst_33 [1] : vector<8x8xf32> to vector<8xf32>
    %73 = vector.shape_cast %72 : vector<8xf32> to vector<8x1xf32>
    %74 = tpu.reciprocal %73 {approx = true} : vector<8x1xf32> -> vector<8x1xf32>
    %75 = vector.broadcast %74 : vector<8x1xf32> to vector<8x8xf32>
    %76 = arith.mulf %71, %75 : vector<8x8xf32>
    %77 = arith.mulf %76, %8 : vector<8x8xf32>
    %cst_34 = arith.constant dense<0.000000e+00> : vector<8x64xf32>
    %78 = tpu.matmul %77, %61, %cst_34 {dimension_numbers = #tpu.dot_dimension_numbers<[1], [0], [0], [1], [0, 0, 1, 1], [], []>} : vector<8x8xf32>, vector<8x64xf32>, vector<8x64xf32> -> vector<8x64xf32>
    %79 = vector.extract_strided_slice %12 {offsets = [0, 192], sizes = [8, 64], strides = [1, 1]} : vector<8x512xf32> to vector<8x64xf32>
    %80 = vector.extract_strided_slice %15 {offsets = [0, 192], sizes = [8, 64], strides = [1, 1]} : vector<8x512xf32> to vector<8x64xf32>
    %81 = vector.extract_strided_slice %18 {offsets = [0, 192], sizes = [8, 64], strides = [1, 1]} : vector<8x512xf32> to vector<8x64xf32>
    %82 = tpu.transpose %80, [1, 0] : vector<8x64xf32> -> vector<64x8xf32>
    %cst_35 = arith.constant dense<0.000000e+00> : vector<8x8xf32>
    %83 = tpu.matmul %79, %82, %cst_35 {dimension_numbers = #tpu.dot_dimension_numbers<[1], [0], [0], [1], [0, 0, 1, 1], [], []>} : vector<8x64xf32>, vector<64x8xf32>, vector<8x8xf32> -> vector<8x8xf32>
    %cst_36 = arith.constant 1.250000e-01 : f32
    %84 = vector.broadcast %cst_36 : f32 to vector<8x8xf32>
    %85 = arith.mulf %83, %84 : vector<8x8xf32>
    %86 = arith.addf %85, %6 : vector<8x8xf32>
    %cst_37 = arith.constant dense<0xFF800000> : vector<8xf32>
    %87 = vector.multi_reduction <maximumf>, %86, %cst_37 [1] : vector<8x8xf32> to vector<8xf32>
    %88 = vector.shape_cast %87 : vector<8xf32> to vector<8x1xf32>
    %89 = vector.broadcast %88 : vector<8x1xf32> to vector<8x8xf32>
    %90 = arith.subf %86, %89 : vector<8x8xf32>
    %91 = math.exp %90 : vector<8x8xf32>
    %cst_38 = arith.constant dense<0.000000e+00> : vector<8xf32>
    %92 = vector.multi_reduction <add>, %91, %cst_38 [1] : vector<8x8xf32> to vector<8xf32>
    %93 = vector.shape_cast %92 : vector<8xf32> to vector<8x1xf32>
    %94 = tpu.reciprocal %93 {approx = true} : vector<8x1xf32> -> vector<8x1xf32>
    %95 = vector.broadcast %94 : vector<8x1xf32> to vector<8x8xf32>
    %96 = arith.mulf %91, %95 : vector<8x8xf32>
    %97 = arith.mulf %96, %8 : vector<8x8xf32>
    %cst_39 = arith.constant dense<0.000000e+00> : vector<8x64xf32>
    %98 = tpu.matmul %97, %81, %cst_39 {dimension_numbers = #tpu.dot_dimension_numbers<[1], [0], [0], [1], [0, 0, 1, 1], [], []>} : vector<8x8xf32>, vector<8x64xf32>, vector<8x64xf32> -> vector<8x64xf32>
    %99 = vector.extract_strided_slice %12 {offsets = [0, 256], sizes = [8, 64], strides = [1, 1]} : vector<8x512xf32> to vector<8x64xf32>
    %100 = vector.extract_strided_slice %15 {offsets = [0, 256], sizes = [8, 64], strides = [1, 1]} : vector<8x512xf32> to vector<8x64xf32>
    %101 = vector.extract_strided_slice %18 {offsets = [0, 256], sizes = [8, 64], strides = [1, 1]} : vector<8x512xf32> to vector<8x64xf32>
    %102 = tpu.transpose %100, [1, 0] : vector<8x64xf32> -> vector<64x8xf32>
    %cst_40 = arith.constant dense<0.000000e+00> : vector<8x8xf32>
    %103 = tpu.matmul %99, %102, %cst_40 {dimension_numbers = #tpu.dot_dimension_numbers<[1], [0], [0], [1], [0, 0, 1, 1], [], []>} : vector<8x64xf32>, vector<64x8xf32>, vector<8x8xf32> -> vector<8x8xf32>
    %cst_41 = arith.constant 1.250000e-01 : f32
    %104 = vector.broadcast %cst_41 : f32 to vector<8x8xf32>
    %105 = arith.mulf %103, %104 : vector<8x8xf32>
    %106 = arith.addf %105, %6 : vector<8x8xf32>
    %cst_42 = arith.constant dense<0xFF800000> : vector<8xf32>
    %107 = vector.multi_reduction <maximumf>, %106, %cst_42 [1] : vector<8x8xf32> to vector<8xf32>
    %108 = vector.shape_cast %107 : vector<8xf32> to vector<8x1xf32>
    %109 = vector.broadcast %108 : vector<8x1xf32> to vector<8x8xf32>
    %110 = arith.subf %106, %109 : vector<8x8xf32>
    %111 = math.exp %110 : vector<8x8xf32>
    %cst_43 = arith.constant dense<0.000000e+00> : vector<8xf32>
    %112 = vector.multi_reduction <add>, %111, %cst_43 [1] : vector<8x8xf32> to vector<8xf32>
    %113 = vector.shape_cast %112 : vector<8xf32> to vector<8x1xf32>
    %114 = tpu.reciprocal %113 {approx = true} : vector<8x1xf32> -> vector<8x1xf32>
    %115 = vector.broadcast %114 : vector<8x1xf32> to vector<8x8xf32>
    %116 = arith.mulf %111, %115 : vector<8x8xf32>
    %117 = arith.mulf %116, %8 : vector<8x8xf32>
    %cst_44 = arith.constant dense<0.000000e+00> : vector<8x64xf32>
    %118 = tpu.matmul %117, %101, %cst_44 {dimension_numbers = #tpu.dot_dimension_numbers<[1], [0], [0], [1], [0, 0, 1, 1], [], []>} : vector<8x8xf32>, vector<8x64xf32>, vector<8x64xf32> -> vector<8x64xf32>
    %119 = vector.extract_strided_slice %12 {offsets = [0, 320], sizes = [8, 64], strides = [1, 1]} : vector<8x512xf32> to vector<8x64xf32>
    %120 = vector.extract_strided_slice %15 {offsets = [0, 320], sizes = [8, 64], strides = [1, 1]} : vector<8x512xf32> to vector<8x64xf32>
    %121 = vector.extract_strided_slice %18 {offsets = [0, 320], sizes = [8, 64], strides = [1, 1]} : vector<8x512xf32> to vector<8x64xf32>
    %122 = tpu.transpose %120, [1, 0] : vector<8x64xf32> -> vector<64x8xf32>
    %cst_45 = arith.constant dense<0.000000e+00> : vector<8x8xf32>
    %123 = tpu.matmul %119, %122, %cst_45 {dimension_numbers = #tpu.dot_dimension_numbers<[1], [0], [0], [1], [0, 0, 1, 1], [], []>} : vector<8x64xf32>, vector<64x8xf32>, vector<8x8xf32> -> vector<8x8xf32>
    %cst_46 = arith.constant 1.250000e-01 : f32
    %124 = vector.broadcast %cst_46 : f32 to vector<8x8xf32>
    %125 = arith.mulf %123, %124 : vector<8x8xf32>
    %126 = arith.addf %125, %6 : vector<8x8xf32>
    %cst_47 = arith.constant dense<0xFF800000> : vector<8xf32>
    %127 = vector.multi_reduction <maximumf>, %126, %cst_47 [1] : vector<8x8xf32> to vector<8xf32>
    %128 = vector.shape_cast %127 : vector<8xf32> to vector<8x1xf32>
    %129 = vector.broadcast %128 : vector<8x1xf32> to vector<8x8xf32>
    %130 = arith.subf %126, %129 : vector<8x8xf32>
    %131 = math.exp %130 : vector<8x8xf32>
    %cst_48 = arith.constant dense<0.000000e+00> : vector<8xf32>
    %132 = vector.multi_reduction <add>, %131, %cst_48 [1] : vector<8x8xf32> to vector<8xf32>
    %133 = vector.shape_cast %132 : vector<8xf32> to vector<8x1xf32>
    %134 = tpu.reciprocal %133 {approx = true} : vector<8x1xf32> -> vector<8x1xf32>
    %135 = vector.broadcast %134 : vector<8x1xf32> to vector<8x8xf32>
    %136 = arith.mulf %131, %135 : vector<8x8xf32>
    %137 = arith.mulf %136, %8 : vector<8x8xf32>
    %cst_49 = arith.constant dense<0.000000e+00> : vector<8x64xf32>
    %138 = tpu.matmul %137, %121, %cst_49 {dimension_numbers = #tpu.dot_dimension_numbers<[1], [0], [0], [1], [0, 0, 1, 1], [], []>} : vector<8x8xf32>, vector<8x64xf32>, vector<8x64xf32> -> vector<8x64xf32>
    %139 = vector.extract_strided_slice %12 {offsets = [0, 384], sizes = [8, 64], strides = [1, 1]} : vector<8x512xf32> to vector<8x64xf32>
    %140 = vector.extract_strided_slice %15 {offsets = [0, 384], sizes = [8, 64], strides = [1, 1]} : vector<8x512xf32> to vector<8x64xf32>
    %141 = vector.extract_strided_slice %18 {offsets = [0, 384], sizes = [8, 64], strides = [1, 1]} : vector<8x512xf32> to vector<8x64xf32>
    %142 = tpu.transpose %140, [1, 0] : vector<8x64xf32> -> vector<64x8xf32>
    %cst_50 = arith.constant dense<0.000000e+00> : vector<8x8xf32>
    %143 = tpu.matmul %139, %142, %cst_50 {dimension_numbers = #tpu.dot_dimension_numbers<[1], [0], [0], [1], [0, 0, 1, 1], [], []>} : vector<8x64xf32>, vector<64x8xf32>, vector<8x8xf32> -> vector<8x8xf32>
    %cst_51 = arith.constant 1.250000e-01 : f32
    %144 = vector.broadcast %cst_51 : f32 to vector<8x8xf32>
    %145 = arith.mulf %143, %144 : vector<8x8xf32>
    %146 = arith.addf %145, %6 : vector<8x8xf32>
    %cst_52 = arith.constant dense<0xFF800000> : vector<8xf32>
    %147 = vector.multi_reduction <maximumf>, %146, %cst_52 [1] : vector<8x8xf32> to vector<8xf32>
    %148 = vector.shape_cast %147 : vector<8xf32> to vector<8x1xf32>
    %149 = vector.broadcast %148 : vector<8x1xf32> to vector<8x8xf32>
    %150 = arith.subf %146, %149 : vector<8x8xf32>
    %151 = math.exp %150 : vector<8x8xf32>
    %cst_53 = arith.constant dense<0.000000e+00> : vector<8xf32>
    %152 = vector.multi_reduction <add>, %151, %cst_53 [1] : vector<8x8xf32> to vector<8xf32>
    %153 = vector.shape_cast %152 : vector<8xf32> to vector<8x1xf32>
    %154 = tpu.reciprocal %153 {approx = true} : vector<8x1xf32> -> vector<8x1xf32>
    %155 = vector.broadcast %154 : vector<8x1xf32> to vector<8x8xf32>
    %156 = arith.mulf %151, %155 : vector<8x8xf32>
    %157 = arith.mulf %156, %8 : vector<8x8xf32>
    %cst_54 = arith.constant dense<0.000000e+00> : vector<8x64xf32>
    %158 = tpu.matmul %157, %141, %cst_54 {dimension_numbers = #tpu.dot_dimension_numbers<[1], [0], [0], [1], [0, 0, 1, 1], [], []>} : vector<8x8xf32>, vector<8x64xf32>, vector<8x64xf32> -> vector<8x64xf32>
    %159 = vector.extract_strided_slice %12 {offsets = [0, 448], sizes = [8, 64], strides = [1, 1]} : vector<8x512xf32> to vector<8x64xf32>
    %160 = vector.extract_strided_slice %15 {offsets = [0, 448], sizes = [8, 64], strides = [1, 1]} : vector<8x512xf32> to vector<8x64xf32>
    %161 = vector.extract_strided_slice %18 {offsets = [0, 448], sizes = [8, 64], strides = [1, 1]} : vector<8x512xf32> to vector<8x64xf32>
    %162 = tpu.transpose %160, [1, 0] : vector<8x64xf32> -> vector<64x8xf32>
    %cst_55 = arith.constant dense<0.000000e+00> : vector<8x8xf32>
    %163 = tpu.matmul %159, %162, %cst_55 {dimension_numbers = #tpu.dot_dimension_numbers<[1], [0], [0], [1], [0, 0, 1, 1], [], []>} : vector<8x64xf32>, vector<64x8xf32>, vector<8x8xf32> -> vector<8x8xf32>
    %cst_56 = arith.constant 1.250000e-01 : f32
    %164 = vector.broadcast %cst_56 : f32 to vector<8x8xf32>
    %165 = arith.mulf %163, %164 : vector<8x8xf32>
    %166 = arith.addf %165, %6 : vector<8x8xf32>
    %cst_57 = arith.constant dense<0xFF800000> : vector<8xf32>
    %167 = vector.multi_reduction <maximumf>, %166, %cst_57 [1] : vector<8x8xf32> to vector<8xf32>
    %168 = vector.shape_cast %167 : vector<8xf32> to vector<8x1xf32>
    %169 = vector.broadcast %168 : vector<8x1xf32> to vector<8x8xf32>
    %170 = arith.subf %166, %169 : vector<8x8xf32>
    %171 = math.exp %170 : vector<8x8xf32>
    %cst_58 = arith.constant dense<0.000000e+00> : vector<8xf32>
    %172 = vector.multi_reduction <add>, %171, %cst_58 [1] : vector<8x8xf32> to vector<8xf32>
    %173 = vector.shape_cast %172 : vector<8xf32> to vector<8x1xf32>
    %174 = tpu.reciprocal %173 {approx = true} : vector<8x1xf32> -> vector<8x1xf32>
    %175 = vector.broadcast %174 : vector<8x1xf32> to vector<8x8xf32>
    %176 = arith.mulf %171, %175 : vector<8x8xf32>
    %177 = arith.mulf %176, %8 : vector<8x8xf32>
    %cst_59 = arith.constant dense<0.000000e+00> : vector<8x64xf32>
    %178 = tpu.matmul %177, %161, %cst_59 {dimension_numbers = #tpu.dot_dimension_numbers<[1], [0], [0], [1], [0, 0, 1, 1], [], []>} : vector<8x8xf32>, vector<8x64xf32>, vector<8x64xf32> -> vector<8x64xf32>
    %179 = tpu.concatenate %38, %58, %78, %98, %118, %138, %158, %178 in 1 : vector<8x64xf32>, vector<8x64xf32>, vector<8x64xf32>, vector<8x64xf32>, vector<8x64xf32>, vector<8x64xf32>, vector<8x64xf32>, vector<8x64xf32> -> vector<8x512xf32>
    %180 = arith.truncf %179 : vector<8x512xf32> to vector<8x512xbf16>
    %c0_60 = arith.constant 0 : index
    %c0_61 = arith.constant 0 : index
    %c0_62 = arith.constant 0 : index
    %181 = vector.load %arg10[%c0_60, %c0_61, %c0_62] : memref<1x512x256xbf16, #tpu.memory_space<vmem>>, vector<1x512x256xbf16>
    %182 = vector.shape_cast %181 : vector<1x512x256xbf16> to vector<512x256xbf16>
    %cst_63 = arith.constant dense<0.000000e+00> : vector<8x256xf32>
    %183 = tpu.matmul %180, %182, %cst_63 {dimension_numbers = #tpu.dot_dimension_numbers<[1], [0], [0], [1], [0, 0, 1, 1], [], []>} : vector<8x512xbf16>, vector<512x256xbf16>, vector<8x256xf32> -> vector<8x256xf32>
    %184 = arith.addf %183, %4 : vector<8x256xf32>
    %cst_64 = arith.constant dense<0.000000e+00> : vector<8xf32>
    %185 = vector.multi_reduction <add>, %184, %cst_64 [1] : vector<8x256xf32> to vector<8xf32>
    %186 = vector.shape_cast %185 : vector<8xf32> to vector<8x1xf32>
    %cst_65 = arith.constant 2.560000e+02 : f32
    %187 = vector.broadcast %cst_65 : f32 to vector<8x1xf32>
    %188 = arith.divf %186, %187 : vector<8x1xf32>
    %189 = vector.broadcast %188 : vector<8x1xf32> to vector<8x256xf32>
    %190 = arith.subf %184, %189 : vector<8x256xf32>
    %191 = arith.mulf %190, %190 : vector<8x256xf32>
    %cst_66 = arith.constant dense<0.000000e+00> : vector<8xf32>
    %192 = vector.multi_reduction <add>, %191, %cst_66 [1] : vector<8x256xf32> to vector<8xf32>
    %193 = vector.shape_cast %192 : vector<8xf32> to vector<8x1xf32>
    %cst_67 = arith.constant 2.560000e+02 : f32
    %194 = vector.broadcast %cst_67 : f32 to vector<8x1xf32>
    %195 = arith.divf %193, %194 : vector<8x1xf32>
    %196 = vector.broadcast %188 : vector<8x1xf32> to vector<8x256xf32>
    %197 = arith.subf %184, %196 : vector<8x256xf32>
    %cst_68 = arith.constant 9.99999974E-6 : f32
    %198 = vector.broadcast %cst_68 : f32 to vector<8x1xf32>
    %199 = arith.addf %195, %198 : vector<8x1xf32>
    %200 = math.rsqrt %199 : vector<8x1xf32>
    %201 = vector.broadcast %200 : vector<8x1xf32> to vector<8x256xf32>
    %202 = arith.mulf %197, %201 : vector<8x256xf32>
    %203 = arith.truncf %202 : vector<8x256xf32> to vector<8x256xbf16>
    %c0_69 = arith.constant 0 : index
    %c0_70 = arith.constant 0 : index
    %c0_71 = arith.constant 0 : index
    %204 = vector.load %arg11[%c0_69, %c0_70, %c0_71] : memref<1x256x256xbf16, #tpu.memory_space<vmem>>, vector<1x256x256xbf16>
    %205 = vector.shape_cast %204 : vector<1x256x256xbf16> to vector<256x256xbf16>
    %cst_72 = arith.constant dense<0.000000e+00> : vector<8x256xf32>
    %206 = tpu.matmul %203, %205, %cst_72 {dimension_numbers = #tpu.dot_dimension_numbers<[1], [0], [0], [1], [0, 0, 1, 1], [], []>} : vector<8x256xbf16>, vector<256x256xbf16>, vector<8x256xf32> -> vector<8x256xf32>
    %cst_73 = arith.constant 0.000000e+00 : f32
    %207 = vector.broadcast %cst_73 : f32 to vector<8x256xf32>
    %208 = arith.maximumf %206, %207 : vector<8x256xf32>
    %209 = arith.truncf %208 : vector<8x256xf32> to vector<8x256xbf16>
    %c0_74 = arith.constant 0 : index
    %c0_75 = arith.constant 0 : index
    %c0_76 = arith.constant 0 : index
    %210 = vector.load %arg12[%c0_74, %c0_75, %c0_76] : memref<1x256x256xbf16, #tpu.memory_space<vmem>>, vector<1x256x256xbf16>
    %211 = vector.shape_cast %210 : vector<1x256x256xbf16> to vector<256x256xbf16>
    %cst_77 = arith.constant dense<0.000000e+00> : vector<8x256xf32>
    %212 = tpu.matmul %209, %211, %cst_77 {dimension_numbers = #tpu.dot_dimension_numbers<[1], [0], [0], [1], [0, 0, 1, 1], [], []>} : vector<8x256xbf16>, vector<256x256xbf16>, vector<8x256xf32> -> vector<8x256xf32>
    %213 = arith.addf %212, %202 : vector<8x256xf32>
    %cst_78 = arith.constant dense<0.000000e+00> : vector<8xf32>
    %214 = vector.multi_reduction <add>, %213, %cst_78 [1] : vector<8x256xf32> to vector<8xf32>
    %215 = vector.shape_cast %214 : vector<8xf32> to vector<8x1xf32>
    %cst_79 = arith.constant 2.560000e+02 : f32
    %216 = vector.broadcast %cst_79 : f32 to vector<8x1xf32>
    %217 = arith.divf %215, %216 : vector<8x1xf32>
    %218 = vector.broadcast %217 : vector<8x1xf32> to vector<8x256xf32>
    %219 = arith.subf %213, %218 : vector<8x256xf32>
    %220 = arith.mulf %219, %219 : vector<8x256xf32>
    %cst_80 = arith.constant dense<0.000000e+00> : vector<8xf32>
    %221 = vector.multi_reduction <add>, %220, %cst_80 [1] : vector<8x256xf32> to vector<8xf32>
    %222 = vector.shape_cast %221 : vector<8xf32> to vector<8x1xf32>
    %cst_81 = arith.constant 2.560000e+02 : f32
    %223 = vector.broadcast %cst_81 : f32 to vector<8x1xf32>
    %224 = arith.divf %222, %223 : vector<8x1xf32>
    %225 = vector.broadcast %217 : vector<8x1xf32> to vector<8x256xf32>
    %226 = arith.subf %213, %225 : vector<8x256xf32>
    %cst_82 = arith.constant 9.99999974E-6 : f32
    %227 = vector.broadcast %cst_82 : f32 to vector<8x1xf32>
    %228 = arith.addf %224, %227 : vector<8x1xf32>
    %229 = math.rsqrt %228 : vector<8x1xf32>
    %230 = vector.broadcast %229 : vector<8x1xf32> to vector<8x256xf32>
    %231 = arith.mulf %226, %230 : vector<8x256xf32>
    %c0_83 = arith.constant 0 : index
    %c0_84 = arith.constant 0 : index
    %c0_85 = arith.constant 0 : index
    %232 = vector.load %arg13[%c0_83, %c0_84, %c0_85] : memref<1x8x256xf32, #tpu.memory_space<vmem>>, vector<1x8x256xf32>
    %233 = vector.shape_cast %232 : vector<1x8x256xf32> to vector<8x256xf32>
    %234 = vector.shape_cast %231 : vector<8x256xf32> to vector<1x8x256xf32>
    tpu.vector_store %arg13[%c0_83, %c0_84, %c0_85], %234 {strides = array<i32>} : memref<1x8x256xf32, #tpu.memory_space<vmem>>, vector<1x8x256xf32>,
    return
  }
  func.func @transform_0(%arg0: i32, %arg1: i32) -> (i32, i32, i32) {
    %c0_i32 = arith.constant 0 : i32
    %c0_i32_0 = arith.constant 0 : i32
    %c0_i32_1 = arith.constant 0 : i32
    return %arg0, %c0_i32, %c0_i32_0 : i32, i32, i32
  }
  func.func @transform_1(%arg0: i32, %arg1: i32) -> (i32, i32, i32) {
    %c0_i32 = arith.constant 0 : i32
    %c0_i32_0 = arith.constant 0 : i32
    %c0_i32_1 = arith.constant 0 : i32
    return %arg0, %c0_i32, %c0_i32_0 : i32, i32, i32
  }
  func.func @transform_2(%arg0: i32, %arg1: i32) -> (i32, i32, i32) {
    %c0_i32 = arith.constant 0 : i32
    %c0_i32_0 = arith.constant 0 : i32
    %c0_i32_1 = arith.constant 0 : i32
    return %arg0, %c0_i32, %c0_i32_0 : i32, i32, i32
  }
  func.func @transform_3(%arg0: i32, %arg1: i32) -> (i32, i32) {
    %c0_i32 = arith.constant 0 : i32
    %c0_i32_0 = arith.constant 0 : i32
    %c0_i32_1 = arith.constant 0 : i32
    return %c0_i32, %c0_i32_0 : i32, i32
  }
  func.func @transform_4(%arg0: i32, %arg1: i32) -> (i32, i32) {
    %c0_i32 = arith.constant 0 : i32
    %c0_i32_0 = arith.constant 0 : i32
    %c0_i32_1 = arith.constant 0 : i32
    return %c0_i32, %c0_i32_0 : i32, i32
  }
  func.func @transform_5(%arg0: i32, %arg1: i32) -> (i32, i32, i32) {
    %c0_i32 = arith.constant 0 : i32
    %c0_i32_0 = arith.constant 0 : i32
    %c0_i32_1 = arith.constant 0 : i32
    return %arg1, %c0_i32, %c0_i32_0 : i32, i32, i32
  }
  func.func @transform_6(%arg0: i32, %arg1: i32) -> (i32, i32, i32) {
    %c0_i32 = arith.constant 0 : i32
    %c0_i32_0 = arith.constant 0 : i32
    %c0_i32_1 = arith.constant 0 : i32
    return %arg1, %c0_i32, %c0_i32_0 : i32, i32, i32
  }
  func.func @transform_7(%arg0: i32, %arg1: i32) -> (i32, i32, i32) {
    %c0_i32 = arith.constant 0 : i32
    %c0_i32_0 = arith.constant 0 : i32
    %c0_i32_1 = arith.constant 0 : i32
    return %arg1, %c0_i32, %c0_i32_0 : i32, i32, i32
  }
  func.func @transform_8(%arg0: i32, %arg1: i32) -> (i32, i32, i32) {
    %c0_i32 = arith.constant 0 : i32
    %c0_i32_0 = arith.constant 0 : i32
    %c0_i32_1 = arith.constant 0 : i32
    return %arg1, %c0_i32, %c0_i32_0 : i32, i32, i32
  }
  func.func @transform_9(%arg0: i32, %arg1: i32) -> (i32, i32, i32) {
    %c0_i32 = arith.constant 0 : i32
    %c0_i32_0 = arith.constant 0 : i32
    %c0_i32_1 = arith.constant 0 : i32
    return %arg1, %c0_i32, %c0_i32_0 : i32, i32, i32
  }
  func.func @transform_10(%arg0: i32, %arg1: i32) -> (i32, i32, i32) {
    %c0_i32 = arith.constant 0 : i32
    %c0_i32_0 = arith.constant 0 : i32
    %c0_i32_1 = arith.constant 0 : i32
    return %arg1, %c0_i32, %c0_i32_0 : i32, i32, i32
  }
  func.func @transform_11(%arg0: i32, %arg1: i32) -> (i32, i32, i32) {
    %c0_i32 = arith.constant 0 : i32
    %c0_i32_0 = arith.constant 0 : i32
    %c0_i32_1 = arith.constant 0 : i32
    return %arg0, %c0_i32, %c0_i32_0 : i32, i32, i32
  }
}

</mosaic_0001>

<bundles_post_ra>
// kernel: encoder_forward.1
= control target key start
LH: loop header
LB: loop body
LE: loop exit
PB: predicated region body
PF: predicated region fallthrough
CT: control target
= control target key end

     0   :  { %s6343_s0 = inlined_call_operand.vmem [shape: f32[1,8,3], index: 0, kind: input, shape index: {}]   ;;  %s6344_s1 = inlined_call_operand.vmem [shape: f32[1,8,8], index: 1, kind: input, shape index: {}]   ;;  %s6345_s2 = inlined_call_operand.vmem [shape: f32[1,8,8], index: 2, kind: input, shape index: {}]   ;;  %s6346_s3 = inlined_call_operand.vmem [shape: f32[3,256], index: 3, kind: input, shape index: {}]   ;;  %s6347_s4 = inlined_call_operand.vmem [shape: f32[1,256], index: 4, kind: input, shape index: {}]   ;;  %s6348_s5 = inlined_call_operand.vmem [shape: bf16[6,256,512], index: 5, kind: input, shape index: {}]   ;;  %s6349_s6 = inlined_call_operand.vmem [shape: bf16[6,256,512], index: 6, kind: input, shape index: {}]   ;;  %s6350_s7 = inlined_call_operand.vmem [shape: bf16[6,256,512], index: 7, kind: input, shape index: {}]   ;;  %s6351_s8 = inlined_call_operand.vmem [shape: bf16[6,512,256], index: 8, kind: input, shape index: {}]   ;;  %s6352_s9 = inlined_call_operand.vmem [shape: bf16[6,256,256], index: 9, kind: input, shape index: {}]   ;;  %s6353_s10 = inlined_call_operand.vmem [shape: bf16[6,256,256], index: 10, kind: input, shape index: {}]   ;;  %s6354_s11 = inlined_call_operand.hbm [shape: f32[1,8,256], index: 11, kind: output, shape index: {}]  }
   0x1   :  { %6355 = sst [smem:[#allocation6_spill]] %s6348_s5 }
   0x2   :  { %16 = vsyncpa [#allocation3], 0  ;;  %s5719_s17 = smov 0   ;;  %s5721_s18 = smov 0  }
   0x3   :  { %s5723_s19 = smov 0  }
   0x4 LB: > { %s31_s21 = sadd.s32 1, %s5646_s18  ;;  %p4543_p1 = scmp.ge.s32.totalorder %s5650_s19, 1  ;;  %s5650_s19 = sphi %s5723_s19, %s22_s19   ;;  %s5646_s18 = sphi %s5721_s18, %s6362_s18   ;;  %s5642_s17 = sphi %s5719_s17, %s6361_s17  }
   0x5   : > { %p32_p0 = scmp.ge.s32.totalorder %s31_s21, 6  ;;  %p427_p2 = scmp.lt.s32.totalorder %s5650_s19, 7 }
   0x7   : > { %s6364_s21 = smov (%p32_p0, %s31_s21), 0  ;;  %p428_p3 = pnand %p4543_p1, %p427_p2 }
   0x8   : > { %6356 = sst [smem:[#allocation5_spill]] %s6364_s21  ;;  %p511_p4 = scmp.lt.s32.totalorder (!%p428_p3), %s5642_s17, 5 }
   0x9   : > { %431 = sbr.rel (%p428_p3) target bundleno = 2846 (0xb1e), region = 64  ;;  %s6357_s5 = sld [smem:[#allocation6_spill]] (!%p428_p3) }
   0xa   : > { %p4556_p5 = scmp.ne.s32.totalorder (!%p428_p3), %s5642_s17, 0 }
  0x10   : > { %s512_s22 = scalar_select %p511_p4, %s5642_s17, 5 }
  0x11   : > { %544 = sbr.rel (%p4556_p5) target bundleno = 159 (0x9f), region = 68  ;;  %v545_v0 = vld [vmem:[%s6343_s0] sm:$0xff] (!%p4556_p5)  ;;  %v5652_v1 = vmov (!%p4556_p5), 0   ;;  %v5653_v2 = vmov (!%p4556_p5), 2   ;;  %v5654_v3 = vmov (!%p4556_p5), 1   ;;  %v549_v4 = vlaneseq (!%p4556_p5) }
  0x12   : > { %s4905_s23 = sshll.u32 %s512_s22, 9  ;;  %s4909_s24 = sshll.u32 %s512_s22, 8  ;;  %5066 = vset.pattern.permute.xlu0 (!%p4556_p5), %v5652_v1  ;;  %5068 = vset.pattern.permute.xlu1 (!%p4556_p5), %v5653_v2  ;;  %v546_v8 = vld [vmem:[%s6346_s3] sm:$0x77] (!%p4556_p5) }
  0x13   : > { %s5741_s27 = scalar_lea.vmem %s6357_s5, %s4905_s23  ;;  %s5746_s30 = scalar_lea.vmem %s6349_s6, %s4905_s23  ;;  %561 = vperm.xlu0 (!%p4556_p5), %5066, %v545_v0   ;;  %614 = vperm.xlu1 (!%p4556_p5), %5068, %v545_v0   ;;  %v550_v5 = vshrl.u32 (!%p4556_p5), %v549_v4, 7  ;;  %v547_v17 = vld [vmem:[%s6347_s4] sm:$0x3] (!%p4556_p5) }
  0x14   : > { %s5751_s14 = scalar_lea.vmem %s6350_s7, %s4905_s23  ;;  %s5756_s20 = scalar_lea.vmem %s6351_s8, %s4905_s23 }
  0x15   : > { %s5761_s25 = scalar_lea.vmem %s6352_s9, %s4909_s24  ;;  %s5766_s28 = scalar_lea.vmem %s6353_s10, %s4909_s24  ;;  %v551_v6 = vsub.s32 (!%p4556_p5), 0, %v550_v5  ;;  %v571_v7 = vsub.s32 (!%p4556_p5), 4, %v550_v5  ;;  %v619_v9 = vsub.s32 (!%p4556_p5), 2, %v550_v5  ;;  %v623_v10 = vsub.s32 (!%p4556_p5), 6, %v550_v5 }
  0x16   : > { %v555_v11 = vsub.s32 (!%p4556_p5), 1, %v550_v5  ;;  %v597_v14 = vsub.s32 (!%p4556_p5), 5, %v550_v5 }
  0x17   : > { %5067 = vset.pattern.permute.xlu0 (!%p4556_p5), %v5654_v3  ;;  %v568_v12 = vrot.slane (!%p4556_p5), %v546_v8, %v551_v6  ;;  %v572_v13 = vrot.slane (!%p4556_p5), %v546_v8, %v571_v7  ;;  %v620_v15 = vrot.slane (!%p4556_p5), %v546_v8, %v619_v9  ;;  %v624_v16 = vrot.slane (!%p4556_p5), %v546_v8, %v623_v10 }
  0x18   : > { %588 = vperm.xlu0 %5067, %v545_v0   ;;  %v594_v20 = vrot.slane %v546_v8, %v555_v11  ;;  %v598_v21 = vrot.slane %v546_v8, %v597_v14  ;;  %v552_v23 = vrot.slane %v547_v17, %v551_v6  ;;  %v556_v24 = vrot.slane %v547_v17, %v555_v11 }
  0x19   : > { %v578_v18 = vrot.slane %v568_v12, %v551_v6  ;;  %v582_v19 = vrot.slane %v572_v13, %v551_v6  ;;  %v630_v25 = vrot.slane %v620_v15, %v619_v9  ;;  %v634_v26 = vrot.slane %v624_v16, %v619_v9 }
  0x1a   : > { %v604_v29 = vrot.slane %v594_v20, %v555_v11  ;;  %v608_v30 = vrot.slane %v598_v21, %v555_v11 }
  0x1c   : > { %5069 = vset.pattern.permute.xlu0 %v5653_v2 }
  0x92   : > { %v562_v22 = vpop.permute.xlu0 %561  ;;  %v615_v31 = vpop.permute.xlu1 %614 }
  0x93   : > { %v583_v27 = vmul.f32 %v578_v18, %v562_v22  ;;  %v584_v28 = vmul.f32 %v582_v19, %v562_v22  ;;  %v635_v33 = vmul.f32 %v630_v25, %v615_v31  ;;  %v636_v34 = vmul.f32 %v634_v26, %v615_v31 }
  0x95   : > { %v585_v35 = vadd.f32 %v583_v27, %v552_v23  ;;  %v586_v36 = vadd.f32 %v584_v28, %v556_v24 }
  0x97   : > { %v589_v32 = vpop.permute.xlu0 %588 }
  0x98   : > { %v609_v37 = vmul.f32 %v604_v29, %v589_v32  ;;  %v610_v38 = vmul.f32 %v608_v30, %v589_v32 }
  0x9a   : > { %v611_v39 = vadd.f32 %v609_v37, %v585_v35  ;;  %v612_v40 = vadd.f32 %v610_v38, %v586_v36 }
  0x9c   : > { %v637_v41 = vadd.f32 %v635_v33, %v611_v39  ;;  %v638_v42 = vadd.f32 %v636_v34, %v612_v40 }
  0x9e   : > { %639 = vst [vmem:[#allocation2] sm:$0xff] %v637_v41  ;;  %640 = vst [vmem:[#allocation2 + $0x8] sm:$0xff] %v638_v42 }
  0x9f PF: > { %v5080_v43 = vld [vmem:[%s5741_s27 + $0x4] ss:$16 sps:$4 sm:$0xff]   ;;  %v5082_v44 = vld [vmem:[%s5741_s27] ss:$16 sps:$4 sm:$0xff]   ;;  %v5094_v49 = vld [vmem:[%s5741_s27 + $0xc] ss:$16 sps:$4 sm:$0xff]  }
  0xa0   : > { %1031 = vmatprep.subr.bf16.mxu0 %v5080_v43  ;;  %v5083_v45 = vld [vmem:[%s5741_s27 + $0x24] ss:$16 sps:$4 sm:$0xff]   ;;  %v5085_v46 = vld [vmem:[%s5741_s27 + $0x20] ss:$16 sps:$4 sm:$0xff]   ;;  %v5097_v50 = vld [vmem:[%s5741_s27 + $0x8] ss:$16 sps:$4 sm:$0xff]   ;;  %1072 = vmatprep.subr.bf16.mxu1 %v5094_v49 }
  0xa1   : > { %1032 = vmatpush1.bf16.msra.mxu0 %v5082_v44  ;;  %v5086_v47 = vld [vmem:[%s5741_s27 + $0x44] ss:$16 sps:$4 sm:$0xff]   ;;  %v5088_v48 = vld [vmem:[%s5741_s27 + $0x40] ss:$16 sps:$4 sm:$0xff]   ;;  %v5100_v52 = vld [vmem:[%s5741_s27 + $0x2c] ss:$16 sps:$4 sm:$0xff]   ;;  %1073 = vmatpush1.bf16.msra.mxu1 %v5097_v50 }
  0xa2   : > { %1033 = vmatprep.subr.bf16.mxu0 %v5083_v45  ;;  %v5089_v51 = vld [vmem:[%s5741_s27 + $0x64] ss:$16 sps:$4 sm:$0xff]   ;;  %v5103_v53 = vld [vmem:[%s5741_s27 + $0x28] ss:$16 sps:$4 sm:$0xff]   ;;  %v5091_v54 = vld [vmem:[%s5741_s27 + $0x60] ss:$16 sps:$4 sm:$0xff]   ;;  %1074 = vmatprep.subr.bf16.mxu1 %v5100_v52 }
  0xa3   : > { %v5092_v55 = vld [vmem:[%s5741_s27 + $0x84] ss:$16 sps:$4 sm:$0xff]   ;;  %v5106_v56 = vld [vmem:[%s5741_s27 + $0x4c] ss:$16 sps:$4 sm:$0xff]   ;;  %v5109_v57 = vld [vmem:[%s5741_s27 + $0x48] ss:$16 sps:$4 sm:$0xff]  }
  0xa4   : > { %v5096_v58 = vld [vmem:[%s5741_s27 + $0x80] ss:$16 sps:$4 sm:$0xff]   ;;  %v5112_v59 = vld [vmem:[%s5741_s27 + $0x6c] ss:$16 sps:$4 sm:$0xff]   ;;  %v5098_v60 = vld [vmem:[%s5741_s27 + $0xa4] ss:$16 sps:$4 sm:$0xff]  }
  0xa5   : > { %1034 = vmatpush1.bf16.msra.mxu0 %v5085_v46  ;;  %1075 = vmatpush1.bf16.msra.mxu1 %v5103_v53  ;;  %v5102_v61 = vld [vmem:[%s5741_s27 + $0xa0] ss:$16 sps:$4 sm:$0xff]   ;;  %v5115_v62 = vld [vmem:[%s5741_s27 + $0x68] ss:$16 sps:$4 sm:$0xff]   ;;  %v5118_v63 = vld [vmem:[%s5741_s27 + $0x8c] ss:$16 sps:$4 sm:$0xff]  }
  0xa6   : > { %1035 = vmatprep.subr.bf16.mxu0 %v5086_v47  ;;  %1076 = vmatprep.subr.bf16.mxu1 %v5106_v56  ;;  %v5104_v0 = vld [vmem:[%s5741_s27 + $0xc4] ss:$16 sps:$4 sm:$0xff]   ;;  %v5121_v1 = vld [vmem:[%s5741_s27 + $0x88] ss:$16 sps:$4 sm:$0xff]   ;;  %v5108_v2 = vld [vmem:[%s5741_s27 + $0xc0] ss:$16 sps:$4 sm:$0xff]  }
  0xa7   : > { %v5124_v3 = vld [vmem:[%s5741_s27 + $0xac] ss:$16 sps:$4 sm:$0xff]   ;;  %v5110_v4 = vld [vmem:[%s5741_s27 + $0xe4] ss:$16 sps:$4 sm:$0xff]   ;;  %v5114_v5 = vld [vmem:[%s5741_s27 + $0xe0] ss:$16 sps:$4 sm:$0xff]  }
  0xa8   : > { %v5127_v6 = vld [vmem:[%s5741_s27 + $0xa8] ss:$16 sps:$4 sm:$0xff]   ;;  %v5130_v7 = vld [vmem:[%s5741_s27 + $0xcc] ss:$16 sps:$4 sm:$0xff]   ;;  %v5116_v8 = vld [vmem:[%s5741_s27 + $0x104] ss:$16 sps:$4 sm:$0xff]  }
  0xa9   : > { %1036 = vmatpush1.bf16.msra.mxu0 %v5088_v48  ;;  %1077 = vmatpush1.bf16.msra.mxu1 %v5109_v57  ;;  %v5133_v9 = vld [vmem:[%s5741_s27 + $0xc8] ss:$16 sps:$4 sm:$0xff]   ;;  %v5120_v10 = vld [vmem:[%s5741_s27 + $0x100] ss:$16 sps:$4 sm:$0xff]   ;;  %v5136_v11 = vld [vmem:[%s5741_s27 + $0xec] ss:$16 sps:$4 sm:$0xff]  }
  0xaa   : > { %1037 = vmatprep.subr.bf16.mxu0 %v5089_v51  ;;  %1078 = vmatprep.subr.bf16.mxu1 %v5112_v59  ;;  %v5122_v12 = vld [vmem:[%s5741_s27 + $0x124] ss:$16 sps:$4 sm:$0xff]   ;;  %v5126_v13 = vld [vmem:[%s5741_s27 + $0x120] ss:$16 sps:$4 sm:$0xff]   ;;  %v5139_v14 = vld [vmem:[%s5741_s27 + $0xe8] ss:$16 sps:$4 sm:$0xff]  }
  0xab   : > { %v5142_v15 = vld [vmem:[%s5741_s27 + $0x10c] ss:$16 sps:$4 sm:$0xff]   ;;  %v5128_v16 = vld [vmem:[%s5741_s27 + $0x144] ss:$16 sps:$4 sm:$0xff]   ;;  %v5132_v17 = vld [vmem:[%s5741_s27 + $0x140] ss:$16 sps:$4 sm:$0xff]  }
  0xac   : > { %v642_v18 = vld [vmem:[#allocation2 + $0x8] sm:$0xff]  ;;  %v5145_v19 = vld [vmem:[%s5741_s27 + $0x108] ss:$16 sps:$4 sm:$0xff]   ;;  %v5148_v21 = vld [vmem:[%s5741_s27 + $0x12c] ss:$16 sps:$4 sm:$0xff]   ;;  %vm5656_vm0 = vmmov 0  }
  0xad   : > { %1038 = vmatpush1.bf16.msra.mxu0 %v5091_v54  ;;  %1079 = vmatpush1.bf16.msra.mxu1 %v5115_v62  ;;  %v5817_v20 = vpack.c.bf16 %v642_v18, %v642_v18  ;;  %v5134_v22 = vld [vmem:[%s5741_s27 + $0x164] ss:$16 sps:$4 sm:$0xff]   ;;  %v5138_v23 = vld [vmem:[%s5741_s27 + $0x160] ss:$16 sps:$4 sm:$0xff]   ;;  %v5151_v24 = vld [vmem:[%s5741_s27 + $0x128] ss:$16 sps:$4 sm:$0xff]  }
  0xae   : > { %1039 = vmatprep.subr.bf16.mxu0 %v5092_v55  ;;  %1080 = vmatprep.subr.bf16.mxu1 %v5118_v63  ;;  %v5154_v25 = vld [vmem:[%s5741_s27 + $0x14c] ss:$16 sps:$4 sm:$0xff]   ;;  %v5140_v26 = vld [vmem:[%s5741_s27 + $0x184] ss:$16 sps:$4 sm:$0xff]   ;;  %v5144_v27 = vld [vmem:[%s5741_s27 + $0x180] ss:$16 sps:$4 sm:$0xff]  }
  0xaf   : > { %1063 = vmatprep.mubr.bf16.mxu0 %v5817_v20  ;;  %1104 = vmatprep.mubr.bf16.mxu1 %v5817_v20  ;;  %v5157_v28 = vld [vmem:[%s5741_s27 + $0x148] ss:$16 sps:$4 sm:$0xff]   ;;  %v5160_v29 = vld [vmem:[%s5741_s27 + $0x16c] ss:$16 sps:$4 sm:$0xff]   ;;  %v5146_v30 = vld [vmem:[%s5741_s27 + $0x1a4] ss:$16 sps:$4 sm:$0xff]  }
  0xb0   : > { %v5150_v31 = vld [vmem:[%s5741_s27 + $0x1a0] ss:$16 sps:$4 sm:$0xff]   ;;  %v5163_v32 = vld [vmem:[%s5741_s27 + $0x168] ss:$16 sps:$4 sm:$0xff]   ;;  %v5164_v33 = vld [vmem:[%s5741_s27 + $0x18c] ss:$16 sps:$4 sm:$0xff]  }
  0xb1   : > { %1040 = vmatpush1.bf16.msra.mxu0 %v5096_v58  ;;  %1081 = vmatpush1.bf16.msra.mxu1 %v5121_v1  ;;  %v5152_v34 = vld [vmem:[%s5741_s27 + $0x1c4] ss:$16 sps:$4 sm:$0xff]   ;;  %v5156_v35 = vld [vmem:[%s5741_s27 + $0x1c0] ss:$16 sps:$4 sm:$0xff]   ;;  %v5169_v36 = vld [vmem:[%s5741_s27 + $0x188] ss:$16 sps:$4 sm:$0xff]  }
  0xb2   : > { %1041 = vmatprep.subr.bf16.mxu0 %v5098_v60  ;;  %1082 = vmatprep.subr.bf16.mxu1 %v5124_v3  ;;  %v5170_v37 = vld [vmem:[%s5741_s27 + $0x1ac] ss:$16 sps:$4 sm:$0xff]   ;;  %v5158_v38 = vld [vmem:[%s5741_s27 + $0x1e4] ss:$16 sps:$4 sm:$0xff]   ;;  %v5162_v39 = vld [vmem:[%s5741_s27 + $0x1e0] ss:$16 sps:$4 sm:$0xff]  }
  0xb3   : > { %v641_v40 = vld [vmem:[#allocation2] sm:$0xff]  ;;  %v5168_v43 = vld [vmem:[%s5746_s30 + $0x4] ss:$16 sps:$4 sm:$0xff]   ;;  %v5166_v44 = vld [vmem:[%s5746_s30] ss:$16 sps:$4 sm:$0xff]   ;;  %vm2045_vm1 = vcmask 523264  }
  0xb4   : > { %v5175_v41 = vld [vmem:[%s5741_s27 + $0x1a8] ss:$16 sps:$4 sm:$0xff]   ;;  %v5176_v42 = vld [vmem:[%s5741_s27 + $0x1cc] ss:$16 sps:$4 sm:$0xff]   ;;  %v5844_v45 = vpack.c.bf16 %v641_v40, %v641_v40  ;;  %v5174_v48 = vld [vmem:[%s5746_s30 + $0x24] ss:$16 sps:$4 sm:$0xff]  }
  0xb5   : > { %1042 = vmatpush1.bf16.msra.mxu0 %v5102_v61  ;;  %1083 = vmatpush1.bf16.msra.mxu1 %v5127_v6  ;;  %v5181_v46 = vld [vmem:[%s5741_s27 + $0x1c8] ss:$16 sps:$4 sm:$0xff]   ;;  %v5182_v47 = vld [vmem:[%s5741_s27 + $0x1ec] ss:$16 sps:$4 sm:$0xff]   ;;  %v5172_v49 = vld [vmem:[%s5746_s30 + $0x20] ss:$16 sps:$4 sm:$0xff]  }
  0xb6   : > { %1043 = vmatprep.subr.bf16.mxu0 %v5104_v0  ;;  %1084 = vmatprep.subr.bf16.mxu1 %v5130_v7  ;;  %v5187_v50 = vld [vmem:[%s5741_s27 + $0x1e8] ss:$16 sps:$4 sm:$0xff]   ;;  %v5193_v51 = vld [vmem:[%s5746_s30 + $0xc] ss:$16 sps:$4 sm:$0xff]   ;;  %v5180_v52 = vld [vmem:[%s5746_s30 + $0x44] ss:$16 sps:$4 sm:$0xff]  }
  0xb7   : > { %v5178_v53 = vld [vmem:[%s5746_s30 + $0x40] ss:$16 sps:$4 sm:$0xff]   ;;  %v5191_v54 = vld [vmem:[%s5746_s30 + $0x8] ss:$16 sps:$4 sm:$0xff]   ;;  %v5199_v55 = vld [vmem:[%s5746_s30 + $0x2c] ss:$16 sps:$4 sm:$0xff]  }
  0xb8   : > { %v5186_v56 = vld [vmem:[%s5746_s30 + $0x64] ss:$16 sps:$4 sm:$0xff]   ;;  %v5184_v57 = vld [vmem:[%s5746_s30 + $0x60] ss:$16 sps:$4 sm:$0xff]   ;;  %v5197_v58 = vld [vmem:[%s5746_s30 + $0x28] ss:$16 sps:$4 sm:$0xff]  }
  0xb9   : > { %1044 = vmatpush1.bf16.msra.mxu0 %v5108_v2  ;;  %1085 = vmatpush1.bf16.msra.mxu1 %v5133_v9  ;;  %v5205_v59 = vld [vmem:[%s5746_s30 + $0x4c] ss:$16 sps:$4 sm:$0xff]   ;;  %v5190_v60 = vld [vmem:[%s5746_s30 + $0x84] ss:$16 sps:$4 sm:$0xff]   ;;  %v5188_v61 = vld [vmem:[%s5746_s30 + $0x80] ss:$16 sps:$4 sm:$0xff]  }
  0xba   : > { %1045 = vmatprep.subr.bf16.mxu0 %v5110_v4  ;;  %1086 = vmatprep.subr.bf16.mxu1 %v5136_v11  ;;  %v5203_v62 = vld [vmem:[%s5746_s30 + $0x48] ss:$16 sps:$4 sm:$0xff]   ;;  %v5211_v63 = vld [vmem:[%s5746_s30 + $0x6c] ss:$16 sps:$4 sm:$0xff]   ;;  %v5196_v0 = vld [vmem:[%s5746_s30 + $0xa4] ss:$16 sps:$4 sm:$0xff]  }
  0xbb   : > { %v5194_v1 = vld [vmem:[%s5746_s30 + $0xa0] ss:$16 sps:$4 sm:$0xff]   ;;  %v5209_v2 = vld [vmem:[%s5746_s30 + $0x68] ss:$16 sps:$4 sm:$0xff]   ;;  %v5217_v3 = vld [vmem:[%s5746_s30 + $0x8c] ss:$16 sps:$4 sm:$0xff]  }
  0xbc   : > { %v5202_v4 = vld [vmem:[%s5746_s30 + $0xc4] ss:$16 sps:$4 sm:$0xff]   ;;  %v5215_v6 = vld [vmem:[%s5746_s30 + $0x88] ss:$16 sps:$4 sm:$0xff]   ;;  %v5223_v7 = vld [vmem:[%s5746_s30 + $0xac] ss:$16 sps:$4 sm:$0xff]  }
  0xbd   : > { %1046 = vmatpush1.bf16.msra.mxu0 %v5114_v5  ;;  %1087 = vmatpush1.bf16.msra.mxu1 %v5139_v14  ;;  %v5200_v5 = vld [vmem:[%s5746_s30 + $0xc0] ss:$16 sps:$4 sm:$0xff]   ;;  %v5221_v9 = vld [vmem:[%s5746_s30 + $0xa8] ss:$16 sps:$4 sm:$0xff]   ;;  %v5229_v11 = vld [vmem:[%s5746_s30 + $0xcc] ss:$16 sps:$4 sm:$0xff]  }
  0xbe   : > { %1047 = vmatprep.subr.bf16.mxu0 %v5116_v8  ;;  %1088 = vmatprep.subr.bf16.mxu1 %v5142_v15  ;;  %v5208_v8 = vld [vmem:[%s5746_s30 + $0xe4] ss:$16 sps:$4 sm:$0xff]   ;;  %v5212_v14 = vld [vmem:[%s5746_s30 + $0x100] ss:$16 sps:$4 sm:$0xff]   ;;  %v5235_v15 = vld [vmem:[%s5746_s30 + $0xec] ss:$16 sps:$4 sm:$0xff]  }
  0xbf   : > { %v5218_v18 = vld [vmem:[%s5746_s30 + $0x120] ss:$16 sps:$4 sm:$0xff]   ;;  %v5265_v40 = vld [vmem:[%s5746_s30 + $0x1ac] ss:$16 sps:$4 sm:$0xff]   ;;  %s5657_s24 = smov 64   ;;  %vm2124_vm2 = vcmask 64512  }
  0xc0   : > { %s6358_s16 = sadd.s32 4294967295, %s5650_s19  }
  0xc1   : > { %1048 = vmatpush1.bf16.msra.mxu0 %v5120_v10  ;;  %1089 = vmatpush1.bf16.msra.mxu1 %v5145_v19  ;;  %v5206_v10 = vld [vmem:[%s5746_s30 + $0xe0] ss:$16 sps:$4 sm:$0xff]   ;;  %v5241_v19 = vld [vmem:[%s5746_s30 + $0x10c] ss:$16 sps:$4 sm:$0xff]   ;;  %p6308_p6 = scmp.eq.s32.totalorder %s6358_s16, 5 }
  0xc2   : > { %1049 = vmatprep.subr.bf16.mxu0 %v5122_v12  ;;  %1090 = vmatprep.subr.bf16.mxu1 %v5148_v21  ;;  %v5214_v12 = vld [vmem:[%s5746_s30 + $0x104] ss:$16 sps:$4 sm:$0xff]  }
  0xc3   : > { %v5226_v21 = vld [vmem:[%s5746_s30 + $0x144] ss:$16 sps:$4 sm:$0xff]  }
  0xc5   : > { %1050 = vmatpush1.bf16.msra.mxu0 %v5126_v13  ;;  %1091 = vmatpush1.bf16.msra.mxu1 %v5151_v24  ;;  %v5227_v13 = vld [vmem:[%s5746_s30 + $0xc8] ss:$16 sps:$4 sm:$0xff]   ;;  %v5247_v24 = vld [vmem:[%s5746_s30 + $0x12c] ss:$16 sps:$4 sm:$0xff]  }
  0xc6   : > { %1051 = vmatprep.subr.bf16.mxu0 %v5128_v16  ;;  %1092 = vmatprep.subr.bf16.mxu1 %v5154_v25  ;;  %v5220_v16 = vld [vmem:[%s5746_s30 + $0x124] ss:$16 sps:$4 sm:$0xff]  }
  0xc7   : > { %v5232_v25 = vld [vmem:[%s5746_s30 + $0x164] ss:$16 sps:$4 sm:$0xff]  }
  0xc9   : > { %1052 = vmatpush1.bf16.msra.mxu0 %v5132_v17  ;;  %1093 = vmatpush1.bf16.msra.mxu1 %v5157_v28  ;;  %v5233_v17 = vld [vmem:[%s5746_s30 + $0xe8] ss:$16 sps:$4 sm:$0xff]   ;;  %v5253_v28 = vld [vmem:[%s5746_s30 + $0x14c] ss:$16 sps:$4 sm:$0xff]  }
  0xca   : > { %1053 = vmatprep.subr.bf16.mxu0 %v5134_v22  ;;  %1094 = vmatprep.subr.bf16.mxu1 %v5160_v29  ;;  %v5239_v22 = vld [vmem:[%s5746_s30 + $0x108] ss:$16 sps:$4 sm:$0xff]   ;;  %v5238_v29 = vld [vmem:[%s5746_s30 + $0x184] ss:$16 sps:$4 sm:$0xff]  }
  0xcd   : > { %1054 = vmatpush1.bf16.msra.mxu0 %v5138_v23  ;;  %1095 = vmatpush1.bf16.msra.mxu1 %v5163_v32  ;;  %v5224_v23 = vld [vmem:[%s5746_s30 + $0x140] ss:$16 sps:$4 sm:$0xff]   ;;  %v5259_v32 = vld [vmem:[%s5746_s30 + $0x16c] ss:$16 sps:$4 sm:$0xff]  }
  0xce   : > { %1055 = vmatprep.subr.bf16.mxu0 %v5140_v26  ;;  %1096 = vmatprep.subr.bf16.mxu1 %v5164_v33  ;;  %v5245_v26 = vld [vmem:[%s5746_s30 + $0x128] ss:$16 sps:$4 sm:$0xff]   ;;  %v5244_v33 = vld [vmem:[%s5746_s30 + $0x1a4] ss:$16 sps:$4 sm:$0xff]  }
  0xd1   : > { %1056 = vmatpush1.bf16.msra.mxu0 %v5144_v27  ;;  %1097 = vmatpush1.bf16.msra.mxu1 %v5169_v36  ;;  %v5230_v27 = vld [vmem:[%s5746_s30 + $0x160] ss:$16 sps:$4 sm:$0xff]   ;;  %v5262_v36 = vld [vmem:[%s5746_s30 + $0x18c] ss:$16 sps:$4 sm:$0xff]  }
  0xd2   : > { %1057 = vmatprep.subr.bf16.mxu0 %v5146_v30  ;;  %1098 = vmatprep.subr.bf16.mxu1 %v5170_v37  ;;  %v5251_v30 = vld [vmem:[%s5746_s30 + $0x148] ss:$16 sps:$4 sm:$0xff]   ;;  %v5250_v37 = vld [vmem:[%s5746_s30 + $0x1c4] ss:$16 sps:$4 sm:$0xff]  }
  0xd5   : > { %1058 = vmatpush1.bf16.msra.mxu0 %v5150_v31  ;;  %1099 = vmatpush1.bf16.msra.mxu1 %v5175_v41  ;;  %v5236_v31 = vld [vmem:[%s5746_s30 + $0x180] ss:$16 sps:$4 sm:$0xff]   ;;  %v5256_v41 = vld [vmem:[%s5746_s30 + $0x1e4] ss:$16 sps:$4 sm:$0xff]  }
  0xd6   : > { %1059 = vmatprep.subr.bf16.mxu0 %v5152_v34  ;;  %1100 = vmatprep.subr.bf16.mxu1 %v5176_v42  ;;  %v5257_v34 = vld [vmem:[%s5746_s30 + $0x168] ss:$16 sps:$4 sm:$0xff]  }
  0xd7   : > { %v5263_v42 = vld [vmem:[%s5746_s30 + $0x1a8] ss:$16 sps:$4 sm:$0xff]  }
  0xd9   : > { %1060 = vmatpush1.bf16.msra.mxu0 %v5156_v35  ;;  %1101 = vmatpush1.bf16.msra.mxu1 %v5181_v46  ;;  %v5242_v35 = vld [vmem:[%s5746_s30 + $0x1a0] ss:$16 sps:$4 sm:$0xff]   ;;  %v5274_v46 = vld [vmem:[%s5751_s14 + $0x4] ss:$16 sps:$4 sm:$0xff]  }
  0xda   : > { %1061 = vmatprep.subr.bf16.mxu0 %v5158_v38  ;;  %1102 = vmatprep.subr.bf16.mxu1 %v5182_v47  ;;  %v5260_v38 = vld [vmem:[%s5746_s30 + $0x188] ss:$16 sps:$4 sm:$0xff]  }
  0xdb   : > { %v5266_v47 = vld [vmem:[%s5746_s30 + $0x1c8] ss:$16 sps:$4 sm:$0xff]  }
  0xdd   : > { %1062 = vmatpush1.bf16.msra.mxu0 %v5162_v39  ;;  %1103 = vmatpush1.bf16.msra.mxu1 %v5187_v50  ;;  %v5248_v39 = vld [vmem:[%s5746_s30 + $0x1c0] ss:$16 sps:$4 sm:$0xff]   ;;  %v5277_v50 = vld [vmem:[%s5751_s14 + $0x24] ss:$16 sps:$4 sm:$0xff]  }
  0xde   : > { %1497 = vmatprep.subr.bf16.mxu0 %v5168_v43  ;;  %1538 = vmatprep.subr.bf16.mxu1 %v5193_v51  ;;  %v5254_v43 = vld [vmem:[%s5746_s30 + $0x1e0] ss:$16 sps:$4 sm:$0xff]   ;;  %v5269_v51 = vld [vmem:[%s5746_s30 + $0x1e8] ss:$16 sps:$4 sm:$0xff]  }
  0xe0   : > { %1064 = vmatmul.mubr.bf16.vlgmr.msra.gmra.mrb[0].mxu0 %v5844_v45  ;;  %1105 = vmatmul.mubr.bf16.vlgmr.msra.gmra.mrb[0].mxu1 %v5844_v45 }
  0xe1   : > { %1498 = vmatpush1.bf16.msra.mxu0 %v5166_v44  ;;  %1529 = vmatprep.mubr.bf16.mxu0 %v5817_v20  ;;  %v5268_v44 = vld [vmem:[%s5746_s30 + $0x1cc] ss:$16 sps:$4 sm:$0xff]  }
  0xe2   : > { %1499 = vmatprep.subr.bf16.mxu0 %v5174_v48  ;;  %1539 = vmatpush1.bf16.msra.mxu1 %v5191_v54  ;;  %v5271_v48 = vld [vmem:[%s5746_s30 + $0x1ec] ss:$16 sps:$4 sm:$0xff]   ;;  %v5278_v54 = vld [vmem:[%s5751_s14 + $0x40] ss:$16 sps:$4 sm:$0xff]  }
  0xe3   : > { %1570 = vmatprep.mubr.bf16.mxu1 %v5817_v20  ;;  %1540 = vmatprep.subr.bf16.mxu1 %v5199_v55  ;;  %v5283_v55 = vld [vmem:[%s5751_s14 + $0x64] ss:$16 sps:$4 sm:$0xff]  }
  0xe5   : > { %1500 = vmatpush1.bf16.msra.mxu0 %v5172_v49  ;;  %v5272_v49 = vld [vmem:[%s5751_s14] ss:$16 sps:$4 sm:$0xff]  }
  0xe6   : > { %1501 = vmatprep.subr.bf16.mxu0 %v5180_v52  ;;  %1541 = vmatpush1.bf16.msra.mxu1 %v5197_v58  ;;  %v5275_v52 = vld [vmem:[%s5751_s14 + $0x20] ss:$16 sps:$4 sm:$0xff]  }
  0xe7   : > { %1542 = vmatprep.subr.bf16.mxu1 %v5205_v59  ;;  %v5284_v58 = vld [vmem:[%s5751_s14 + $0x80] ss:$16 sps:$4 sm:$0xff]   ;;  %v5289_v59 = vld [vmem:[%s5751_s14 + $0xa4] ss:$16 sps:$4 sm:$0xff]  }
  0xe9   : > { %1502 = vmatpush1.bf16.msra.mxu0 %v5178_v53  ;;  %v5280_v53 = vld [vmem:[%s5751_s14 + $0x44] ss:$16 sps:$4 sm:$0xff]  }
  0xea   : > { %1503 = vmatprep.subr.bf16.mxu0 %v5186_v56  ;;  %1543 = vmatpush1.bf16.msra.mxu1 %v5203_v62  ;;  %v5281_v56 = vld [vmem:[%s5751_s14 + $0x60] ss:$16 sps:$4 sm:$0xff]   ;;  %v5295_v62 = vld [vmem:[%s5751_s14 + $0xe4] ss:$16 sps:$4 sm:$0xff]  }
  0xeb   : > { %1544 = vmatprep.subr.bf16.mxu1 %v5211_v63  ;;  %v5293_v63 = vld [vmem:[%s5751_s14 + $0xe0] ss:$16 sps:$4 sm:$0xff]  }
  0xed   : > { %1504 = vmatpush1.bf16.msra.mxu0 %v5184_v57  ;;  %v5286_v57 = vld [vmem:[%s5751_s14 + $0x84] ss:$16 sps:$4 sm:$0xff]  }
  0xee   : > { %1505 = vmatprep.subr.bf16.mxu0 %v5190_v60  ;;  %1545 = vmatpush1.bf16.msra.mxu1 %v5209_v2  ;;  %v5292_v60 = vld [vmem:[%s5751_s14 + $0xc4] ss:$16 sps:$4 sm:$0xff]  }
  0xef   : > { %1546 = vmatprep.subr.bf16.mxu1 %v5217_v3  ;;  %v5301_v2 = vld [vmem:[%s5751_s14 + $0x124] ss:$16 sps:$4 sm:$0xff]   ;;  %v5299_v3 = vld [vmem:[%s5751_s14 + $0x120] ss:$16 sps:$4 sm:$0xff]  }
  0xf1   : > { %1506 = vmatpush1.bf16.msra.mxu0 %v5188_v61  ;;  %v5290_v61 = vld [vmem:[%s5751_s14 + $0xc0] ss:$16 sps:$4 sm:$0xff]  }
  0xf2   : > { %1507 = vmatprep.subr.bf16.mxu0 %v5196_v0  ;;  %1547 = vmatpush1.bf16.msra.mxu1 %v5215_v6  ;;  %v5298_v0 = vld [vmem:[%s5751_s14 + $0x104] ss:$16 sps:$4 sm:$0xff]  }
  0xf3   : > { %1548 = vmatprep.subr.bf16.mxu1 %v5223_v7  ;;  %v5307_v6 = vld [vmem:[%s5751_s14 + $0x164] ss:$16 sps:$4 sm:$0xff]   ;;  %v5305_v7 = vld [vmem:[%s5751_s14 + $0x160] ss:$16 sps:$4 sm:$0xff]  }
  0xf5   : > { %1508 = vmatpush1.bf16.msra.mxu0 %v5194_v1  ;;  %v5296_v1 = vld [vmem:[%s5751_s14 + $0x100] ss:$16 sps:$4 sm:$0xff]  }
  0xf6   : > { %1509 = vmatprep.subr.bf16.mxu0 %v5202_v4  ;;  %1549 = vmatpush1.bf16.msra.mxu1 %v5221_v9  ;;  %v5304_v4 = vld [vmem:[%s5751_s14 + $0x144] ss:$16 sps:$4 sm:$0xff]   ;;  %v5308_v9 = vld [vmem:[%s5751_s14 + $0x180] ss:$16 sps:$4 sm:$0xff]  }
  0xf7   : > { %1550 = vmatprep.subr.bf16.mxu1 %v5229_v11  ;;  %v5311_v11 = vld [vmem:[%s5751_s14 + $0x1a0] ss:$16 sps:$4 sm:$0xff]  }
  0xf9   : > { %1510 = vmatpush1.bf16.msra.mxu0 %v5200_v5  ;;  %v5302_v5 = vld [vmem:[%s5751_s14 + $0x140] ss:$16 sps:$4 sm:$0xff]  }
  0xfa   : > { %1511 = vmatprep.subr.bf16.mxu0 %v5208_v8  ;;  %1551 = vmatpush1.bf16.msra.mxu1 %v5227_v13  ;;  %v5310_v8 = vld [vmem:[%s5751_s14 + $0x184] ss:$16 sps:$4 sm:$0xff]   ;;  %v5314_v13 = vld [vmem:[%s5751_s14 + $0x1c0] ss:$16 sps:$4 sm:$0xff]  }
  0xfb   : > { %1552 = vmatprep.subr.bf16.mxu1 %v5235_v15  ;;  %v5317_v15 = vld [vmem:[%s5751_s14 + $0x1e0] ss:$16 sps:$4 sm:$0xff]  }
  0xfd   : > { %1512 = vmatpush1.bf16.msra.mxu0 %v5206_v10  ;;  %v5313_v10 = vld [vmem:[%s5751_s14 + $0x1a4] ss:$16 sps:$4 sm:$0xff]  }
  0xfe   : > { %1513 = vmatprep.subr.bf16.mxu0 %v5214_v12  ;;  %1553 = vmatpush1.bf16.msra.mxu1 %v5233_v17  ;;  %v5316_v12 = vld [vmem:[%s5751_s14 + $0x1c4] ss:$16 sps:$4 sm:$0xff]  }
  0xff   : > { %1554 = vmatprep.subr.bf16.mxu1 %v5241_v19 }
 0x101   : > { %1514 = vmatpush1.bf16.msra.mxu0 %v5212_v14  ;;  %v5319_v14 = vld [vmem:[%s5751_s14 + $0x1e4] ss:$16 sps:$4 sm:$0xff]  }
 0x102   : > { %1515 = vmatprep.subr.bf16.mxu0 %v5220_v16  ;;  %1555 = vmatpush1.bf16.msra.mxu1 %v5239_v22  ;;  %v5655_v16 = vmov 0.0  }
 0x103   : > { %1556 = vmatprep.subr.bf16.mxu1 %v5247_v24 }
 0x105   : > { %1516 = vmatpush1.bf16.msra.mxu0 %v5218_v18 }
 0x106   : > { %1517 = vmatprep.subr.bf16.mxu0 %v5226_v21  ;;  %1557 = vmatpush1.bf16.msra.mxu1 %v5245_v26 }
 0x107   : > { %1558 = vmatprep.subr.bf16.mxu1 %v5253_v28 }
 0x109   : > { %1518 = vmatpush1.bf16.msra.mxu0 %v5224_v23 }
 0x10a   : > { %1519 = vmatprep.subr.bf16.mxu0 %v5232_v25  ;;  %1559 = vmatpush1.bf16.msra.mxu1 %v5251_v30 }
 0x10b   : > { %1560 = vmatprep.subr.bf16.mxu1 %v5259_v32 }
 0x10d   : > { %1520 = vmatpush1.bf16.msra.mxu0 %v5230_v27 }
 0x10e   : > { %1521 = vmatprep.subr.bf16.mxu0 %v5238_v29  ;;  %1561 = vmatpush1.bf16.msra.mxu1 %v5257_v34 }
 0x10f   : > { %1562 = vmatprep.subr.bf16.mxu1 %v5262_v36 }
 0x111   : > { %1522 = vmatpush1.bf16.msra.mxu0 %v5236_v31 }
 0x112   : > { %1523 = vmatprep.subr.bf16.mxu0 %v5244_v33  ;;  %1563 = vmatpush1.bf16.msra.mxu1 %v5260_v38  ;;  %v5320_v38 = vld [vmem:[%s5751_s14 + $0x8] ss:$16 sps:$4 sm:$0xff]  }
 0x113   : > { %1564 = vmatprep.subr.bf16.mxu1 %v5265_v40  ;;  %v5325_v40 = vld [vmem:[%s5751_s14 + $0x2c] ss:$16 sps:$4 sm:$0xff]  }
 0x115   : > { %1524 = vmatpush1.bf16.msra.mxu0 %v5242_v35 }
 0x116   : > { %1525 = vmatprep.subr.bf16.mxu0 %v5250_v37  ;;  %1565 = vmatpush1.bf16.msra.mxu1 %v5263_v42  ;;  %v5328_v42 = vld [vmem:[%s5751_s14 + $0x4c] ss:$16 sps:$4 sm:$0xff]  }
 0x117   : > { %1566 = vmatprep.subr.bf16.mxu1 %v5268_v44  ;;  %v5331_v44 = vld [vmem:[%s5751_s14 + $0x6c] ss:$16 sps:$4 sm:$0xff]  }
 0x119   : > { %1526 = vmatpush1.bf16.msra.mxu0 %v5248_v39  ;;  %v5322_v39 = vld [vmem:[%s5751_s14 + $0xc] ss:$16 sps:$4 sm:$0xff]  }
 0x11a   : > { %1527 = vmatprep.subr.bf16.mxu0 %v5256_v41  ;;  %1567 = vmatpush1.bf16.msra.mxu1 %v5266_v47  ;;  %v5323_v41 = vld [vmem:[%s5751_s14 + $0x28] ss:$16 sps:$4 sm:$0xff]   ;;  %v5334_v47 = vld [vmem:[%s5751_s14 + $0x8c] ss:$16 sps:$4 sm:$0xff]  }
 0x11b   : > { %1568 = vmatprep.subr.bf16.mxu1 %v5271_v48  ;;  %v5332_v48 = vld [vmem:[%s5751_s14 + $0x88] ss:$16 sps:$4 sm:$0xff]  }
 0x11d   : > { %1528 = vmatpush1.bf16.msra.mxu0 %v5254_v43  ;;  %v5326_v43 = vld [vmem:[%s5751_s14 + $0x48] ss:$16 sps:$4 sm:$0xff]  }
 0x11e   : > { %1963 = vmatprep.subr.bf16.mxu0 %v5274_v46  ;;  %1569 = vmatpush1.bf16.msra.mxu1 %v5269_v51  ;;  %v5329_v46 = vld [vmem:[%s5751_s14 + $0x68] ss:$16 sps:$4 sm:$0xff]   ;;  %v5340_v51 = vld [vmem:[%s5751_s14 + $0xcc] ss:$16 sps:$4 sm:$0xff]  }
 0x11f   : > { %2004 = vmatprep.subr.bf16.mxu1 %v5322_v39 }
 0x120   : > { %1530 = vmatmul.mubr.bf16.vlgmr.msra.gmra.mrb[4].mxu0 %v5844_v45 }
 0x121   : > { %1964 = vmatpush1.bf16.msra.mxu0 %v5272_v49  ;;  %1995 = vmatprep.mubr.bf16.mxu0 %v5817_v20  ;;  %v5337_v49 = vld [vmem:[%s5751_s14 + $0xac] ss:$16 sps:$4 sm:$0xff]  }
 0x122   : > { %1965 = vmatprep.subr.bf16.mxu0 %v5277_v50  ;;  %1571 = vmatmul.mubr.bf16.vlgmr.msra.gmra.mrb[4].mxu1 %v5844_v45  ;;  %v5335_v50 = vld [vmem:[%s5751_s14 + $0xa8] ss:$16 sps:$4 sm:$0xff]  }
 0x123   : > { %2036 = vmatprep.mubr.bf16.mxu1 %v5817_v20  ;;  %v5287_v20 = vld [vmem:[%s5751_s14 + $0xa0] ss:$16 sps:$4 sm:$0xff]   ;;  %2005 = vmatpush1.bf16.msra.mxu1 %v5320_v38 }
 0x124   : > { %2006 = vmatprep.subr.bf16.mxu1 %v5325_v40 }
 0x125   : > { %1966 = vmatpush1.bf16.msra.mxu0 %v5275_v52 }
 0x126   : > { %1967 = vmatprep.subr.bf16.mxu0 %v5280_v53  ;;  %v5338_v53 = vld [vmem:[%s5751_s14 + $0xc8] ss:$16 sps:$4 sm:$0xff]  }
 0x127   : > { %2007 = vmatpush1.bf16.msra.mxu1 %v5323_v41 }
 0x128   : > { %2008 = vmatprep.subr.bf16.mxu1 %v5328_v42 }
 0x129   : > { %1968 = vmatpush1.bf16.msra.mxu0 %v5278_v54  ;;  %v5343_v54 = vld [vmem:[%s5751_s14 + $0xec] ss:$16 sps:$4 sm:$0xff]  }
 0x12a   : > { %1969 = vmatprep.subr.bf16.mxu0 %v5283_v55 }
 0x12b   : > { %2009 = vmatpush1.bf16.msra.mxu1 %v5326_v43 }
 0x12c   : > { %2010 = vmatprep.subr.bf16.mxu1 %v5331_v44 }
 0x12d   : > { %1970 = vmatpush1.bf16.msra.mxu0 %v5281_v56  ;;  %v5341_v56 = vld [vmem:[%s5751_s14 + $0xe8] ss:$16 sps:$4 sm:$0xff]  }
 0x12e   : > { %1971 = vmatprep.subr.bf16.mxu0 %v5286_v57 }
 0x12f   : > { %2011 = vmatpush1.bf16.msra.mxu1 %v5329_v46 }
 0x130   : > { %2012 = vmatprep.subr.bf16.mxu1 %v5334_v47 }
 0x131   : > { %1972 = vmatpush1.bf16.msra.mxu0 %v5284_v58  ;;  %v5346_v58 = vld [vmem:[%s5751_s14 + $0x10c] ss:$16 sps:$4 sm:$0xff]  }
 0x132   : > { %1973 = vmatprep.subr.bf16.mxu0 %v5289_v59  ;;  %v5344_v59 = vld [vmem:[%s5751_s14 + $0x108] ss:$16 sps:$4 sm:$0xff]  }
 0x133   : > { %2013 = vmatpush1.bf16.msra.mxu1 %v5332_v48 }
 0x134   : > { %2014 = vmatprep.subr.bf16.mxu1 %v5337_v49 }
 0x135   : > { %1974 = vmatpush1.bf16.msra.mxu0 %v5287_v20  ;;  %v5349_v20 = vld [vmem:[%s5751_s14 + $0x12c] ss:$16 sps:$4 sm:$0xff]  }
 0x136   : > { %1975 = vmatprep.subr.bf16.mxu0 %v5292_v60 }
 0x137   : > { %2015 = vmatpush1.bf16.msra.mxu1 %v5335_v50 }
 0x138   : > { %2016 = vmatprep.subr.bf16.mxu1 %v5340_v51 }
 0x139   : > { %1976 = vmatpush1.bf16.msra.mxu0 %v5290_v61  ;;  %v5347_v61 = vld [vmem:[%s5751_s14 + $0x128] ss:$16 sps:$4 sm:$0xff]  }
 0x13a   : > { %1977 = vmatprep.subr.bf16.mxu0 %v5295_v62 }
 0x13b   : > { %2017 = vmatpush1.bf16.msra.mxu1 %v5338_v53 }
 0x13c   : > { %2018 = vmatprep.subr.bf16.mxu1 %v5343_v54 }
 0x13d   : > { %1978 = vmatpush1.bf16.msra.mxu0 %v5293_v63  ;;  %v5352_v63 = vld [vmem:[%s5751_s14 + $0x14c] ss:$16 sps:$4 sm:$0xff]  }
 0x13e   : > { %1979 = vmatprep.subr.bf16.mxu0 %v5298_v0  ;;  %v5350_v0 = vld [vmem:[%s5751_s14 + $0x148] ss:$16 sps:$4 sm:$0xff]  }
 0x13f   : > { %2019 = vmatpush1.bf16.msra.mxu1 %v5341_v56 }
 0x140   : > { %2020 = vmatprep.subr.bf16.mxu1 %v5346_v58 }
 0x141   : > { %1980 = vmatpush1.bf16.msra.mxu0 %v5296_v1  ;;  %v5355_v1 = vld [vmem:[%s5751_s14 + $0x16c] ss:$16 sps:$4 sm:$0xff]  }
 0x142   : > { %1981 = vmatprep.subr.bf16.mxu0 %v5301_v2 }
 0x143   : > { %2021 = vmatpush1.bf16.msra.mxu1 %v5344_v59 }
 0x144   : > { %2022 = vmatprep.subr.bf16.mxu1 %v5349_v20 }
 0x145   : > { %1982 = vmatpush1.bf16.msra.mxu0 %v5299_v3  ;;  %v5353_v3 = vld [vmem:[%s5751_s14 + $0x168] ss:$16 sps:$4 sm:$0xff]  }
 0x146   : > { %1983 = vmatprep.subr.bf16.mxu0 %v5304_v4 }
 0x147   : > { %2023 = vmatpush1.bf16.msra.mxu1 %v5347_v61 }
 0x148   : > { %2024 = vmatprep.subr.bf16.mxu1 %v5352_v63 }
 0x149   : > { %1984 = vmatpush1.bf16.msra.mxu0 %v5302_v5  ;;  %v5358_v5 = vld [vmem:[%s5751_s14 + $0x18c] ss:$16 sps:$4 sm:$0xff]  }
 0x14a   : > { %1985 = vmatprep.subr.bf16.mxu0 %v5307_v6  ;;  %v5356_v6 = vld [vmem:[%s5751_s14 + $0x188] ss:$16 sps:$4 sm:$0xff]  }
 0x14b   : > { %2025 = vmatpush1.bf16.msra.mxu1 %v5350_v0 }
 0x14c   : > { %2026 = vmatprep.subr.bf16.mxu1 %v5355_v1 }
 0x14d   : > { %1986 = vmatpush1.bf16.msra.mxu0 %v5305_v7  ;;  %v5361_v7 = vld [vmem:[%s5751_s14 + $0x1ac] ss:$16 sps:$4 sm:$0xff]  }
 0x14e   : > { %1987 = vmatprep.subr.bf16.mxu0 %v5310_v8 }
 0x14f   : > { %2027 = vmatpush1.bf16.msra.mxu1 %v5353_v3 }
 0x150   : > { %2028 = vmatprep.subr.bf16.mxu1 %v5358_v5 }
 0x151   : > { %1988 = vmatpush1.bf16.msra.mxu0 %v5308_v9  ;;  %v5359_v9 = vld [vmem:[%s5751_s14 + $0x1a8] ss:$16 sps:$4 sm:$0xff]  }
 0x152   : > { %1989 = vmatprep.subr.bf16.mxu0 %v5313_v10  ;;  %v5364_v10 = vld [vmem:[%s5751_s14 + $0x1cc] ss:$16 sps:$4 sm:$0xff]  }
 0x153   : > { %2029 = vmatpush1.bf16.msra.mxu1 %v5356_v6 }
 0x154   : > { %2030 = vmatprep.subr.bf16.mxu1 %v5361_v7 }
 0x155   : > { %1990 = vmatpush1.bf16.msra.mxu0 %v5311_v11  ;;  %v5362_v11 = vld [vmem:[%s5751_s14 + $0x1c8] ss:$16 sps:$4 sm:$0xff]  }
 0x156   : > { %1991 = vmatprep.subr.bf16.mxu0 %v5316_v12  ;;  %v5367_v12 = vld [vmem:[%s5751_s14 + $0x1ec] ss:$16 sps:$4 sm:$0xff]  }
 0x157   : > { %2031 = vmatpush1.bf16.msra.mxu1 %v5359_v9 }
 0x158   : > { %2032 = vmatprep.subr.bf16.mxu1 %v5364_v10 }
 0x159   : > { %1992 = vmatpush1.bf16.msra.mxu0 %v5314_v13  ;;  %v5365_v13 = vld [vmem:[%s5751_s14 + $0x1e8] ss:$16 sps:$4 sm:$0xff]  }
 0x15a   : > { %1993 = vmatprep.subr.bf16.mxu0 %v5319_v14 }
 0x15b   : > { %2033 = vmatpush1.bf16.msra.mxu1 %v5362_v11 }
 0x15c   : > { %2034 = vmatprep.subr.bf16.mxu1 %v5367_v12 }
 0x15d   : > { %1994 = vmatpush1.bf16.msra.mxu0 %v5317_v15  ;;  %v643_v15 = vld [vmem:[%s6344_s1] sm:$0xff] }
 0x15e   : > { %4943 = vmatprep.subr.mxu0 %v5655_v16 }
 0x15f   : > { %2035 = vmatpush1.bf16.msra.mxu1 %v5365_v13 }
 0x160   : > { %1996 = vmatmul.mubr.bf16.vlgmr.msra.gmra.mrb[8].mxu0 %v5844_v45  ;;  %4948 = vmatprep.subr.mxu1 %v5655_v16 }
 0x161   : > { %4945 = vmatprep.mubr.msk.f32.mxu0 %vm5656_vm0, %v5655_v16 }
 0x162   : > { %2037 = vmatmul.mubr.bf16.vlgmr.msra.gmra.mrb[8].mxu1 %v5844_v45 }
 0x163   : > { %4950 = vmatprep.mubr.msk.f32.mxu1 %vm5656_vm0, %v5655_v16 }
 0x1b3   : > { %v1065_v17 = vpop.f32.mrb[0].mxu0  ;;  %v5957_v22 = vpop.f32.mrb[0].mxu1 }
 0x1b4   : > { %v5955_v18 = vpop.f32.mrb[1].mxu0  ;;  %v5959_v23 = vpop.f32.mrb[1].mxu1 }
 0x1b5   : > { %v1069_v19 = vpop.f32.mrb[2].mxu0  ;;  %v1110_v24 = vpop.f32.mrb[2].mxu1 }
 0x1b6   : > { %v1070_v21 = vpop.f32.mrb[3].mxu0  ;;  %v1111_v25 = vpop.f32.mrb[3].mxu1 }
 0x1f3   : > { %v1531_v26 = vpop.f32.mrb[4].mxu0 }
 0x1f4   : > { %2212 = vrot.lane.b32.xlu0 %v1531_v26, %s5657_s24  ;;  %v1533_v27 = vpop.f32.mrb[5].mxu0  ;;  %4944 = vmatpush3.xpose.msk.msra.mxu0 %vm2045_vm1, %v1531_v26 }
 0x1f5   : > { %2544 = vrot.lane.b32.xlu1 %v1533_v27, %s5657_s24  ;;  %v1535_v28 = vpop.f32.mrb[6].mxu0  ;;  %4953 = vmatprep.subr.mxu0 %v5655_v16  ;;  %v5971_v30 = vpop.f32.mrb[4].mxu1 }
 0x1f6   : > { %v1536_v29 = vpop.f32.mrb[7].mxu0  ;;  %v5973_v31 = vpop.f32.mrb[5].mxu1 }
 0x1f7   : > { %4946 = vmatmul.mubr.msk.f32.vlgmr.msra.gmra.mrb[12].mxu0 %vm2045_vm1, %v1065_v17  ;;  %v1576_v32 = vpop.f32.mrb[6].mxu1 }
 0x1f8   : > { %2210 = vrot.lane.b32.xlu0 %v1065_v17, %s5657_s24  ;;  %4955 = vmatprep.mubr.msk.f32.mxu0 %vm5656_vm0, %v5655_v16  ;;  %v1577_v33 = vpop.f32.mrb[7].mxu1 }
 0x1f9   : > { %2542 = vrot.lane.b32.xlu1 %v5955_v18, %s5657_s24 }
 0x1fc   : > { %2876 = vrot.lane.b32.xlu0 %v5971_v30, %s5657_s24 }
 0x1fd   : > { %2874 = vrot.lane.b32.xlu1 %v5957_v22, %s5657_s24 }
 0x200   : > { %3208 = vrot.lane.b32.xlu0 %v5973_v31, %s5657_s24 }
 0x201   : > { %3206 = vrot.lane.b32.xlu1 %v5959_v23, %s5657_s24 }
 0x233   : > { %v5983_v34 = vpop.f32.mrb[8].mxu0 }
 0x234   : > { %v5985_v35 = vpop.f32.mrb[9].mxu0  ;;  %4949 = vmatpush3.msra.mxu1 %v5983_v34 }
 0x235   : > { %v2001_v36 = vpop.f32.mrb[10].mxu0  ;;  %4958 = vmatprep.subr.mxu1 %v5655_v16  ;;  %v6080_v63 = vpop.f32.mrb[8].mxu1 }
 0x236   : > { %v2002_v37 = vpop.f32.mrb[11].mxu0  ;;  %v6082_v0 = vpop.f32.mrb[9].mxu1 }
 0x237   : > { %v2042_v1 = vpop.f32.mrb[10].mxu1 }
 0x266   : > { %v2213_v52 = vpop.permute.xlu0 %2212 }
 0x267   : > { %4954 = vmatpush3.xpose.msk.msra.mxu0 %vm2045_vm1, %v2213_v52  ;;  %v2545_v57 = vpop.permute.xlu1 %2544 }
 0x268   : > { %4963 = vmatprep.subr.mxu0 %v5655_v16 }
 0x26a   : > { %v2211_v55 = vpop.permute.xlu0 %2210 }
 0x26b   : > { %4956 = vmatmul.mubr.msk.f32.vlgmr.msra.gmra.mrb[14].mxu0 %vm2045_vm1, %v2211_v55  ;;  %v2543_v60 = vpop.permute.xlu1 %2542 }
 0x26c   : > { %4964 = vmatpush3.xpose.msk.msra.mxu0 %vm2045_vm1, %v1533_v27  ;;  %4965 = vmatprep.mubr.msk.f32.mxu0 %vm5656_vm0, %v5655_v16 }
 0x26d   : > { %4973 = vmatprep.subr.mxu0 %v5655_v16 }
 0x26e   : > { %v2877_v62 = vpop.permute.xlu0 %2876 }
 0x26f   : > { %4966 = vmatmul.mubr.msk.f32.vlgmr.msra.gmra.mrb[16].mxu0 %vm2045_vm1, %v5955_v18  ;;  %v2875_v2 = vpop.permute.xlu1 %2874 }
 0x270   : > { %4974 = vmatpush3.xpose.msk.msra.mxu0 %vm2045_vm1, %v2545_v57  ;;  %4975 = vmatprep.mubr.msk.f32.mxu0 %vm5656_vm0, %v5655_v16 }
 0x271   : > { %4983 = vmatprep.subr.mxu0 %v5655_v16 }
 0x272   : > { %v3209_v4 = vpop.permute.xlu0 %3208 }
 0x273   : > { %4976 = vmatmul.mubr.msk.f32.vlgmr.msra.gmra.mrb[18].mxu0 %vm2045_vm1, %v2543_v60  ;;  %v3207_v8 = vpop.permute.xlu1 %3206 }
 0x274   : > { %4984 = vmatpush3.xpose.msk.msra.mxu0 %vm2045_vm1, %v5971_v30  ;;  %4985 = vmatprep.mubr.msk.f32.mxu0 %vm5656_vm0, %v5655_v16 }
 0x275   : > { %4993 = vmatprep.subr.mxu0 %v5655_v16 }
 0x277   : > { %4986 = vmatmul.mubr.msk.f32.vlgmr.msra.gmra.mrb[20].mxu0 %vm2045_vm1, %v5957_v22 }
 0x278   : > { %4994 = vmatpush3.xpose.msk.msra.mxu0 %vm2045_vm1, %v2877_v62  ;;  %4995 = vmatprep.mubr.msk.f32.mxu0 %vm5656_vm0, %v5655_v16 }
 0x279   : > { %5003 = vmatprep.subr.mxu0 %v5655_v16 }
 0x27b   : > { %4996 = vmatmul.mubr.msk.f32.vlgmr.msra.gmra.mrb[22].mxu0 %vm2045_vm1, %v2875_v2  ;;  %v2043_v2 = vpop.f32.mrb[11].mxu1 }
 0x27c   : > { %5004 = vmatpush3.xpose.msk.msra.mxu0 %vm2045_vm1, %v5973_v31  ;;  %5005 = vmatprep.mubr.msk.f32.mxu0 %vm5656_vm0, %v5655_v16 }
 0x27d   : > { %5013 = vmatprep.subr.mxu0 %v5655_v16 }
 0x27f   : > { %5006 = vmatmul.mubr.msk.f32.vlgmr.msra.gmra.mrb[24].mxu0 %vm2045_vm1, %v5959_v23 }
 0x280   : > { %5014 = vmatpush3.xpose.msk.msra.mxu0 %vm2045_vm1, %v3209_v4  ;;  %5015 = vmatprep.mubr.msk.f32.mxu0 %vm5656_vm0, %v5655_v16 }
 0x283   : > { %5016 = vmatmul.mubr.msk.f32.vlgmr.msra.gmra.mrb[26].mxu0 %vm2045_vm1, %v3207_v8 }
 0x2ca   : > { %v2118_v14 = vpop.f32.mrb[12].mxu0 }
 0x2cb   : > { %v2122_v17 = vmul.f32 0.125, %v2118_v14  ;;  %v4947_v18 = vpop.f32.mrb[13].mxu0 }
 0x2cd   : > { %v2123_v19 = vadd.f32 %v2122_v17, %v643_v15 }
 0x2cf   : > { %v2125_v21 = vsel %vm2124_vm2, %v2123_v19, -inf }
 0x2d0   : > { %2126 = vmax.xlane.f32.xlu0 %v2125_v21 }
 0x33e   : > { %v2284_v45 = vpop.f32.mrb[14].mxu0 }
 0x33f   : > { %v2288_v22 = vmul.f32 0.125, %v2284_v45  ;;  %v4957_v23 = vpop.f32.mrb[15].mxu0 }
 0x341   : > { %v2289_v24 = vadd.f32 %v2288_v22, %v643_v15 }
 0x342   : > { %v2451_v25 = vpop.f32.mrb[16].mxu0 }
 0x343   : > { %v2455_v26 = vmul.f32 0.125, %v2451_v25  ;;  %v4967_v27 = vpop.f32.mrb[17].mxu0  ;;  %v2290_v28 = vsel %vm2124_vm2, %v2289_v24, -inf  ;;  %v6098_v25 = vld [vmem:[%s6345_s2] sm:$0xff] }
 0x344   : > { %2291 = vmax.xlane.f32.xlu1 %v2290_v28 }
 0x345   : > { %v2456_v29 = vadd.f32 %v2455_v26, %v643_v15 }
 0x346   : > { %v2616_v30 = vpop.f32.mrb[18].mxu0 }
 0x347   : > { %v2620_v31 = vmul.f32 0.125, %v2616_v30  ;;  %v4977_v32 = vpop.f32.mrb[19].mxu0  ;;  %v2457_v33 = vsel %vm2124_vm2, %v2456_v29, -inf }
 0x348   : > { %2458 = vmax.xlane.f32.xlu0 %v2457_v33 }
 0x349   : > { %v2621_v36 = vadd.f32 %v2620_v31, %v643_v15 }
 0x34a   : > { %v2783_v37 = vpop.f32.mrb[20].mxu0 }
 0x34b   : > { %v2787_v38 = vmul.f32 0.125, %v2783_v37  ;;  %v4987_v39 = vpop.f32.mrb[21].mxu0  ;;  %v2622_v40 = vsel %vm2124_vm2, %v2621_v36, -inf }
 0x34c   : > { %2623 = vmax.xlane.f32.xlu0 %v2622_v40 }
 0x34d   : > { %v6069_v41 = vadd.f32 %v2787_v38, %v643_v15 }
 0x34e   : > { %v2948_v42 = vpop.f32.mrb[22].mxu0 }
 0x34f   : > { %v2952_v43 = vmul.f32 0.125, %v2948_v42  ;;  %v4997_v44 = vpop.f32.mrb[23].mxu0  ;;  %v2789_v46 = vsel %vm2124_vm2, %v6069_v41, -inf }
 0x350   : > { %2790 = vmax.xlane.f32.xlu1 %v2789_v46 }
 0x351   : > { %v6073_v47 = vadd.f32 %v2952_v43, %v643_v15 }
 0x352   : > { %v3115_v48 = vpop.f32.mrb[24].mxu0 }
 0x353   : > { %v3119_v49 = vmul.f32 0.125, %v3115_v48  ;;  %v5007_v50 = vpop.f32.mrb[25].mxu0  ;;  %v2954_v51 = vsel %vm2124_vm2, %v6073_v47, -inf }
 0x354   : > { %2955 = vmax.xlane.f32.xlu0 %v2954_v51 }
 0x355   : > { %v3120_v52 = vadd.f32 %v3119_v49, %v643_v15 }
 0x356   : > { %v3280_v53 = vpop.f32.mrb[26].mxu0 }
 0x357   : > { %v3284_v54 = vmul.f32 0.125, %v3280_v53  ;;  %v5017_v55 = vpop.f32.mrb[27].mxu0  ;;  %v3121_v56 = vsel %vm2124_vm2, %v3120_v52, -inf }
 0x358   : > { %3122 = vmax.xlane.f32.xlu1 %v3121_v56 }
 0x359   : > { %v3285_v57 = vadd.f32 %v3284_v54, %v643_v15 }
 0x35b   : > { %v3286_v58 = vsel %vm2124_vm2, %v3285_v57, -inf }
 0x35c   : > { %3287 = vmax.xlane.f32.xlu0 %v3286_v58 }
 0x35d   : > { %v2127_v59 = vpop.xlane.xlu0 %2126 }
 0x35e   : > { %v2128_v20 = vsub.f32 %v2123_v19, %v2127_v59 }
 0x360   : > { %v2129_v60 = vmul.f32 1.442695, %v2128_v20 }
 0x362   : > { %5560 = vpow2.f32 %v2129_v60 }
 0x36c   : > { %v5561_v61 = vpop.eup %5560 }
 0x36d   : > { %v2131_v62 = vsel %vm2124_vm2, %v5561_v61, 0.0 }
 0x36e   : > { %2132 = vadd.xlane.f32.xlu1 %v2131_v62 }
 0x3d1   : > { %v2292_v3 = vpop.xlane.xlu1 %2291 }
 0x3d2   : > { %v2293_v4 = vsub.f32 %v2289_v24, %v2292_v3 }
 0x3d4   : > { %v2294_v5 = vmul.f32 1.442695, %v2293_v4 }
 0x3d5   : > { %v2459_v6 = vpop.xlane.xlu0 %2458 }
 0x3d6   : > { %5562 = vpow2.f32 %v2294_v5  ;;  %v2460_v7 = vsub.f32 %v2456_v29, %v2459_v6 }
 0x3d8   : > { %v2461_v8 = vmul.f32 1.442695, %v2460_v7 }
 0x3d9   : > { %v2624_v9 = vpop.xlane.xlu0 %2623 }
 0x3da   : > { %5564 = vpow2.f32 %v2461_v8  ;;  %v2625_v10 = vsub.f32 %v2621_v36, %v2624_v9 }
 0x3dc   : > { %v2626_v11 = vmul.f32 1.442695, %v2625_v10 }
 0x3dd   : > { %v2791_v19 = vpop.xlane.xlu1 %2790 }
 0x3de   : > { %5566 = vpow2.f32 %v2626_v11  ;;  %v2792_v22 = vsub.f32 %v6069_v41, %v2791_v19  ;;  %v5374_v19 = vld [vmem:[%s5756_s20 + $0x20] ss:$8 sps:$4 sm:$0xff]  }
 0x3e0   : > { %v5563_v12 = vpop.eup %5562  ;;  %v2793_v28 = vmul.f32 1.442695, %v2792_v22  ;;  %v5382_v22 = vld [vmem:[%s5756_s20 + $0x44] ss:$8 sps:$4 sm:$0xff]  }
 0x3e1   : > { %v2296_v13 = vsel %vm2124_vm2, %v5563_v12, 0.0  ;;  %v2956_v23 = vpop.xlane.xlu0 %2955 }
 0x3e2   : > { %2297 = vadd.xlane.f32.xlu0 %v2296_v13  ;;  %v2957_v27 = vsub.f32 %v6073_v47, %v2956_v23  ;;  %v5380_v23 = vld [vmem:[%s5756_s20 + $0x40] ss:$8 sps:$4 sm:$0xff]  }
 0x3e4   : > { %v5565_v14 = vpop.eup %5564  ;;  %v2958_v31 = vmul.f32 1.442695, %v2957_v27  ;;  %v5386_v27 = vld [vmem:[%s5756_s20 + $0x60] ss:$8 sps:$4 sm:$0xff]  }
 0x3e5   : > { %v2463_v15 = vsel %vm2124_vm2, %v5565_v14, 0.0  ;;  %v3123_v21 = vpop.xlane.xlu1 %3122 }
 0x3e6   : > { %2464 = vadd.xlane.f32.xlu1 %v2463_v15  ;;  %v3124_v29 = vsub.f32 %v3120_v52, %v3123_v21  ;;  %v5370_v15 = vld [vmem:[%s5756_s20 + $0x4] ss:$8 sps:$4 sm:$0xff]   ;;  %v5379_v21 = vld [vmem:[%s5756_s20 + $0x34] ss:$8 sps:$4 sm:$0xff]  }
 0x3e7   : > { %3783 = vmatprep.subr.bf16.mxu0 %v5370_v15  ;;  %v5433_v15 = vld [vmem:[%s5756_s20 + $0x154] ss:$8 sps:$4 sm:$0xff]  }
 0x3e8   : > { %v6086_v17 = vpop.eup %5566  ;;  %v3125_v32 = vmul.f32 1.442695, %v3124_v29  ;;  %v5389_v29 = vld [vmem:[%s5756_s20 + $0x70] ss:$8 sps:$4 sm:$0xff]  }
 0x3e9   : > { %v2628_v18 = vsel %vm2124_vm2, %v6086_v17, 0.0  ;;  %v3288_v30 = vpop.xlane.xlu0 %3287 }
 0x3ea   : > { %2629 = vadd.xlane.f32.xlu0 %v2628_v18  ;;  %v3289_v33 = vsub.f32 %v3285_v57, %v3288_v30  ;;  %v5373_v18 = vld [vmem:[%s5756_s20 + $0x14] ss:$8 sps:$4 sm:$0xff]   ;;  %v5392_v30 = vld [vmem:[%s5756_s20 + $0x80] ss:$8 sps:$4 sm:$0xff]  }
 0x3ec   : > { %v3290_v36 = vmul.f32 1.442695, %v3289_v33  ;;  %v5400_v33 = vld [vmem:[%s5756_s20 + $0xa4] ss:$8 sps:$4 sm:$0xff]  }
 0x3f7   : > { %2303 = vrot.lane.b32.xlu1 %v5983_v34, %s5657_s24 }
 0x3fb   : > { %v2133_v45 = vpop.xlane.xlu1 %2132 }
 0x3fc   : > { %5568 = vrcp.f32 %v2133_v45  ;;  %v5377_v45 = vld [vmem:[%s5756_s20 + $0x30] ss:$8 sps:$4 sm:$0xff]  }
 0x3fd   : > { %5570 = vpow2.f32 %v2793_v28  ;;  %v5391_v28 = vld [vmem:[%s5756_s20 + $0x74] ss:$8 sps:$4 sm:$0xff]  }
 0x3fe   : > { %5572 = vpow2.f32 %v2958_v31  ;;  %v5397_v31 = vld [vmem:[%s5756_s20 + $0x94] ss:$8 sps:$4 sm:$0xff]  }
 0x3ff   : > { %5574 = vpow2.f32 %v3125_v32  ;;  %v5395_v32 = vld [vmem:[%s5756_s20 + $0x90] ss:$8 sps:$4 sm:$0xff]  }
 0x400   : > { %2635 = vrot.lane.b32.xlu0 %v5985_v35, %s5657_s24  ;;  %5576 = vpow2.f32 %v3290_v36  ;;  %v5398_v36 = vld [vmem:[%s5756_s20 + $0xa0] ss:$8 sps:$4 sm:$0xff]  }
 0x406   : > { %v5569_v24 = vpop.eup %5568 }
 0x407   : > { %v2135_v26 = vmul.f32 %v5569_v24, %v5561_v61  ;;  %v5571_v37 = vpop.eup %5570  ;;  %v5385_v24 = vld [vmem:[%s5756_s20 + $0x54] ss:$8 sps:$4 sm:$0xff]  }
 0x408   : > { %v5573_v38 = vpop.eup %5572  ;;  %v2795_v39 = vsel %vm2124_vm2, %v5571_v37, 0.0 }
 0x409   : > { %v2136_v34 = vmul.f32 %v2135_v26, %v6098_v25  ;;  %v5575_v40 = vpop.eup %5574  ;;  %v2960_v42 = vsel %vm2124_vm2, %v5573_v38, 0.0  ;;  %v5388_v26 = vld [vmem:[%s5756_s20 + $0x64] ss:$8 sps:$4 sm:$0xff]  }
 0x40a   : > { %v3127_v41 = vsel %vm2124_vm2, %v5575_v40, 0.0  ;;  %v6108_v43 = vpop.eup %5576 }
 0x40b   : > { %4951 = vmatmul.mubr.msk.f32.vlgmr.msra.gmra.mrb[12].mxu1 %vm2124_vm2, %v2136_v34  ;;  %v3292_v44 = vsel %vm2124_vm2, %v6108_v43, 0.0  ;;  %v5394_v34 = vld [vmem:[%s5756_s20 + $0x84] ss:$8 sps:$4 sm:$0xff]  }
 0x40c   : > { %4960 = vmatprep.mubr.msk.f32.mxu1 %vm5656_vm0, %v5655_v16 }
 0x41b   : > { %2796 = vadd.xlane.f32.xlu1 %v2795_v39  ;;  %v5406_v39 = vld [vmem:[%s5756_s20 + $0xc4] ss:$8 sps:$4 sm:$0xff]  }
 0x41f   : > { %3128 = vadd.xlane.f32.xlu1 %v3127_v41  ;;  %2961 = vadd.xlane.f32.xlu0 %v2960_v42  ;;  %v5409_v41 = vld [vmem:[%s5756_s20 + $0xd4] ss:$8 sps:$4 sm:$0xff]   ;;  %v5407_v42 = vld [vmem:[%s5756_s20 + $0xd0] ss:$8 sps:$4 sm:$0xff]  }
 0x423   : > { %3293 = vadd.xlane.f32.xlu0 %v3292_v44  ;;  %v5410_v44 = vld [vmem:[%s5756_s20 + $0xe0] ss:$8 sps:$4 sm:$0xff]  }
 0x430   : > { %2967 = vrot.lane.b32.xlu1 %v6080_v63, %s5657_s24 }
 0x439   : > { %3299 = vrot.lane.b32.xlu0 %v6082_v0, %s5657_s24 }
 0x46f   : > { %v2298_v46 = vpop.xlane.xlu0 %2297 }
 0x470   : > { %5578 = vrcp.f32 %v2298_v46  ;;  %v5415_v46 = vld [vmem:[%s5756_s20 + $0xf4] ss:$8 sps:$4 sm:$0xff]  }
 0x473   : > { %v2465_v47 = vpop.xlane.xlu1 %2464 }
 0x474   : > { %5580 = vrcp.f32 %v2465_v47 }
 0x477   : > { %v2304_v48 = vpop.permute.xlu1 %2303  ;;  %v2630_v49 = vpop.xlane.xlu0 %2629 }
 0x478   : > { %5582 = vrcp.f32 %v2630_v49  ;;  %4959 = vmatpush3.msra.mxu1 %v2304_v48  ;;  %v5413_v48 = vld [vmem:[%s5756_s20 + $0xf0] ss:$8 sps:$4 sm:$0xff]  }
 0x479   : > { %4968 = vmatprep.subr.mxu1 %v5655_v16 }
 0x47a   : > { %v5579_v50 = vpop.eup %5578 }
 0x47b   : > { %v2300_v51 = vmul.f32 %v5579_v50, %v5563_v12  ;;  %v2636_v58 = vpop.permute.xlu0 %2635  ;;  %v5418_v50 = vld [vmem:[%s5756_s20 + $0x104] ss:$8 sps:$4 sm:$0xff]  }
 0x47d   : > { %v2301_v52 = vmul.f32 %v2300_v51, %v6098_v25 }
 0x47e   : > { %v5581_v53 = vpop.eup %5580 }
 0x47f   : > { %v2467_v54 = vmul.f32 %v5581_v53, %v5565_v14  ;;  %4961 = vmatmul.mubr.msk.f32.vlgmr.msra.gmra.mrb[14].mxu1 %vm2124_vm2, %v2301_v52  ;;  %v5368_v14 = vld [vmem:[%s5756_s20] ss:$8 sps:$4 sm:$0xff]  }
 0x480   : > { %4969 = vmatpush3.msra.mxu1 %v5985_v35  ;;  %4970 = vmatprep.mubr.msk.f32.mxu1 %vm5656_vm0, %v5655_v16 }
 0x481   : > { %4978 = vmatprep.subr.mxu1 %v5655_v16  ;;  %v2468_v55 = vmul.f32 %v2467_v54, %v6098_v25  ;;  %3784 = vmatpush1.bf16.msra.mxu0 %v5368_v14  ;;  %v5428_v14 = vld [vmem:[%s5756_s20 + $0x140] ss:$8 sps:$4 sm:$0xff]  }
 0x482   : > { %v5583_v56 = vpop.eup %5582  ;;  %3785 = vmatprep.subr.bf16.mxu0 %v5373_v18  ;;  %v5436_v18 = vld [vmem:[%s5756_s20 + $0x164] ss:$8 sps:$4 sm:$0xff]  }
 0x483   : > { %v2632_v57 = vmul.f32 %v5583_v56, %v6086_v17  ;;  %4971 = vmatmul.mubr.msk.f32.vlgmr.msra.gmra.mrb[16].mxu1 %vm2124_vm2, %v2468_v55  ;;  %v5371_v17 = vld [vmem:[%s5756_s20 + $0x10] ss:$8 sps:$4 sm:$0xff]  }
 0x484   : > { %4979 = vmatpush3.msra.mxu1 %v2636_v58  ;;  %4980 = vmatprep.mubr.msk.f32.mxu1 %vm5656_vm0, %v5655_v16 }
 0x485   : > { %4988 = vmatprep.subr.mxu1 %v5655_v16  ;;  %v2633_v35 = vmul.f32 %v2632_v57, %v6098_v25  ;;  %3786 = vmatpush1.bf16.msra.mxu0 %v5371_v17  ;;  %v5431_v17 = vld [vmem:[%s5756_s20 + $0x150] ss:$8 sps:$4 sm:$0xff]  }
 0x487   : > { %4981 = vmatmul.mubr.msk.f32.vlgmr.msra.gmra.mrb[18].mxu1 %vm2124_vm2, %v2633_v35 }
 0x488   : > { %4989 = vmatpush3.msra.mxu1 %v6080_v63  ;;  %4990 = vmatprep.mubr.msk.f32.mxu1 %vm5656_vm0, %v5655_v16 }
 0x489   : > { %4998 = vmatprep.subr.mxu1 %v5655_v16 }
 0x4a8   : > { %v2797_v59 = vpop.xlane.xlu1 %2796 }
 0x4a9   : > { %5584 = vrcp.f32 %v2797_v59 }
 0x4ac   : > { %v3129_v20 = vpop.xlane.xlu1 %3128  ;;  %v2962_v60 = vpop.xlane.xlu0 %2961 }
 0x4ad   : > { %5586 = vrcp.f32 %v3129_v20 }
 0x4ae   : > { %5588 = vrcp.f32 %v2962_v60 }
 0x4b0   : > { %v3294_v61 = vpop.xlane.xlu0 %3293  ;;  %v2968_v3 = vpop.permute.xlu1 %2967 }
 0x4b1   : > { %5590 = vrcp.f32 %v3294_v61 }
 0x4b3   : > { %v5585_v62 = vpop.eup %5584 }
 0x4b4   : > { %v2799_v1 = vmul.f32 %v5585_v62, %v5571_v37  ;;  %v3300_v11 = vpop.permute.xlu0 %3299  ;;  %v5403_v37 = vld [vmem:[%s5756_s20 + $0xb4] ss:$8 sps:$4 sm:$0xff]  }
 0x4b6   : > { %v2800_v2 = vmul.f32 %v2799_v1, %v6098_v25 }
 0x4b7   : > { %v5587_v4 = vpop.eup %5586 }
 0x4b8   : > { %v5589_v63 = vpop.eup %5588  ;;  %4991 = vmatmul.mubr.msk.f32.vlgmr.msra.gmra.mrb[20].mxu1 %vm2124_vm2, %v2800_v2  ;;  %v3131_v6 = vmul.f32 %v5587_v4, %v5575_v40  ;;  %v5404_v40 = vld [vmem:[%s5756_s20 + $0xc0] ss:$8 sps:$4 sm:$0xff]  }
 0x4b9   : > { %v2964_v5 = vmul.f32 %v5589_v63, %v5573_v38  ;;  %4999 = vmatpush3.msra.mxu1 %v2968_v3  ;;  %5000 = vmatprep.mubr.msk.f32.mxu1 %vm5656_vm0, %v5655_v16  ;;  %v5401_v38 = vld [vmem:[%s5756_s20 + $0xb0] ss:$8 sps:$4 sm:$0xff]  }
 0x4ba   : > { %5008 = vmatprep.subr.mxu1 %v5655_v16  ;;  %v3132_v10 = vmul.f32 %v3131_v6, %v6098_v25 }
 0x4bb   : > { %v2965_v7 = vmul.f32 %v2964_v5, %v6098_v25  ;;  %v5591_v8 = vpop.eup %5590 }
 0x4bc   : > { %v3296_v9 = vmul.f32 %v5591_v8, %v6108_v43  ;;  %v5412_v43 = vld [vmem:[%s5756_s20 + $0xe4] ss:$8 sps:$4 sm:$0xff]   ;;  %v5421_v8 = vld [vmem:[%s5756_s20 + $0x114] ss:$8 sps:$4 sm:$0xff]  }
 0x4bd   : > { %5001 = vmatmul.mubr.msk.f32.vlgmr.msra.gmra.mrb[22].mxu1 %vm2124_vm2, %v2965_v7  ;;  %v5416_v7 = vld [vmem:[%s5756_s20 + $0x100] ss:$8 sps:$4 sm:$0xff]  }
 0x4be   : > { %5009 = vmatpush3.msra.mxu1 %v6082_v0  ;;  %5010 = vmatprep.mubr.msk.f32.mxu1 %vm5656_vm0, %v5655_v16  ;;  %v3297_v0 = vmul.f32 %v3296_v9, %v6098_v25  ;;  %v5383_v25 = vld [vmem:[%s5756_s20 + $0x50] ss:$8 sps:$4 sm:$0xff]  }
 0x4bf   : > { %5018 = vmatprep.subr.mxu1 %v5655_v16  ;;  %v5419_v9 = vld [vmem:[%s5756_s20 + $0x110] ss:$8 sps:$4 sm:$0xff]  }
 0x4c1   : > { %5011 = vmatmul.mubr.msk.f32.vlgmr.msra.gmra.mrb[24].mxu1 %vm2124_vm2, %v3132_v10  ;;  %v5424_v10 = vld [vmem:[%s5756_s20 + $0x124] ss:$8 sps:$4 sm:$0xff]  }
 0x4c2   : > { %5019 = vmatpush3.msra.mxu1 %v3300_v11  ;;  %5020 = vmatprep.mubr.msk.f32.mxu1 %vm5656_vm0, %v5655_v16  ;;  %v5376_v16 = vld [vmem:[%s5756_s20 + $0x24] ss:$8 sps:$4 sm:$0xff]   ;;  %v5422_v11 = vld [vmem:[%s5756_s20 + $0x120] ss:$8 sps:$4 sm:$0xff]  }
 0x4c3   : > { %3787 = vmatprep.subr.bf16.mxu0 %v5376_v16  ;;  %v5434_v16 = vld [vmem:[%s5756_s20 + $0x160] ss:$8 sps:$4 sm:$0xff]  }
 0x4c4   : > { %3788 = vmatpush1.bf16.msra.mxu0 %v5374_v19  ;;  %v5439_v19 = vld [vmem:[%s5756_s20 + $0x174] ss:$8 sps:$4 sm:$0xff]  }
 0x4c5   : > { %5021 = vmatmul.mubr.msk.f32.vlgmr.msra.gmra.mrb[26].mxu1 %vm2124_vm2, %v3297_v0  ;;  %3789 = vmatprep.subr.bf16.mxu0 %v5379_v21  ;;  %v5427_v0 = vld [vmem:[%s5756_s20 + $0x134] ss:$8 sps:$4 sm:$0xff]   ;;  %v5437_v21 = vld [vmem:[%s5756_s20 + $0x170] ss:$8 sps:$4 sm:$0xff]  }
 0x4c8   : > { %3790 = vmatpush1.bf16.msra.mxu0 %v5377_v45  ;;  %v5442_v45 = vld [vmem:[%s5756_s20 + $0x184] ss:$8 sps:$4 sm:$0xff]  }
 0x4c9   : > { %3791 = vmatprep.subr.bf16.mxu0 %v5382_v22  ;;  %v5440_v22 = vld [vmem:[%s5756_s20 + $0x180] ss:$8 sps:$4 sm:$0xff]  }
 0x4cc   : > { %3792 = vmatpush1.bf16.msra.mxu0 %v5380_v23  ;;  %v5445_v23 = vld [vmem:[%s5756_s20 + $0x194] ss:$8 sps:$4 sm:$0xff]  }
 0x4cd   : > { %3793 = vmatprep.subr.bf16.mxu0 %v5385_v24  ;;  %v5443_v24 = vld [vmem:[%s5756_s20 + $0x190] ss:$8 sps:$4 sm:$0xff]  }
 0x4d0   : > { %3794 = vmatpush1.bf16.msra.mxu0 %v5383_v25  ;;  %v5448_v25 = vld [vmem:[%s5756_s20 + $0x1a4] ss:$8 sps:$4 sm:$0xff]  }
 0x4d1   : > { %3795 = vmatprep.subr.bf16.mxu0 %v5388_v26  ;;  %v5446_v26 = vld [vmem:[%s5756_s20 + $0x1a0] ss:$8 sps:$4 sm:$0xff]  }
 0x4d4   : > { %3796 = vmatpush1.bf16.msra.mxu0 %v5386_v27  ;;  %v5451_v27 = vld [vmem:[%s5756_s20 + $0x1b4] ss:$8 sps:$4 sm:$0xff]  }
 0x4d5   : > { %3797 = vmatprep.subr.bf16.mxu0 %v5391_v28  ;;  %v5449_v28 = vld [vmem:[%s5756_s20 + $0x1b0] ss:$8 sps:$4 sm:$0xff]  }
 0x4d8   : > { %3798 = vmatpush1.bf16.msra.mxu0 %v5389_v29  ;;  %v5454_v29 = vld [vmem:[%s5756_s20 + $0x1c4] ss:$8 sps:$4 sm:$0xff]  }
 0x4d9   : > { %3799 = vmatprep.subr.bf16.mxu0 %v5394_v34  ;;  %v5452_v34 = vld [vmem:[%s5756_s20 + $0x1c0] ss:$8 sps:$4 sm:$0xff]  }
 0x4dc   : > { %3800 = vmatpush1.bf16.msra.mxu0 %v5392_v30  ;;  %v5457_v30 = vld [vmem:[%s5756_s20 + $0x1d4] ss:$8 sps:$4 sm:$0xff]  }
 0x4dd   : > { %3801 = vmatprep.subr.bf16.mxu0 %v5397_v31  ;;  %v5455_v31 = vld [vmem:[%s5756_s20 + $0x1d0] ss:$8 sps:$4 sm:$0xff]  }
 0x4de   : > { %v6153_v12 = vpop.f32.mrb[12].mxu1 }
 0x4df   : > { %v4952_v13 = vpop.f32.mrb[13].mxu1 }
 0x4e0   : > { %3802 = vmatpush1.bf16.msra.mxu0 %v5395_v32  ;;  %v5430_v13 = vld [vmem:[%s5756_s20 + $0x144] ss:$8 sps:$4 sm:$0xff]  }
 0x4e1   : > { %3803 = vmatprep.subr.bf16.mxu0 %v5400_v33  ;;  %v5460_v32 = vld [vmem:[%s5756_s20 + $0x1e4] ss:$8 sps:$4 sm:$0xff]   ;;  %v5458_v33 = vld [vmem:[%s5756_s20 + $0x1e0] ss:$8 sps:$4 sm:$0xff]  }
 0x4e4   : > { %3804 = vmatpush1.bf16.msra.mxu0 %v5398_v36  ;;  %v5463_v36 = vld [vmem:[%s5756_s20 + $0x1f4] ss:$8 sps:$4 sm:$0xff]  }
 0x4e5   : > { %3805 = vmatprep.subr.bf16.mxu0 %v5403_v37 }
 0x4e8   : > { %3806 = vmatpush1.bf16.msra.mxu0 %v5401_v38 }
 0x4e9   : > { %3807 = vmatprep.subr.bf16.mxu0 %v5406_v39 }
 0x4ec   : > { %3808 = vmatpush1.bf16.msra.mxu0 %v5404_v40  ;;  %v5461_v40 = vld [vmem:[%s5756_s20 + $0x1f0] ss:$8 sps:$4 sm:$0xff]  }
 0x4ed   : > { %3809 = vmatprep.subr.bf16.mxu0 %v5409_v41 }
 0x4f0   : > { %3810 = vmatpush1.bf16.msra.mxu0 %v5407_v42 }
 0x4f1   : > { %3811 = vmatprep.subr.bf16.mxu0 %v5412_v43 }
 0x4f4   : > { %3812 = vmatpush1.bf16.msra.mxu0 %v5410_v44 }
 0x4f5   : > { %3813 = vmatprep.subr.bf16.mxu0 %v5415_v46 }
 0x4f8   : > { %3814 = vmatpush1.bf16.msra.mxu0 %v5413_v48 }
 0x4f9   : > { %3824 = vmatprep.subr.bf16.mxu0 %v5418_v50  ;;  %v5597_v50 = vld [vmem:[#allocation2 + $0x8] sm:$0xff] }
 0x552   : > { %v2375_v47 = vpop.f32.mrb[14].mxu1 }
 0x553   : > { %v4962_v49 = vpop.f32.mrb[15].mxu1 }
 0x556   : > { %v2538_v51 = vpop.f32.mrb[16].mxu1 }
 0x557   : > { %v4972_v52 = vpop.f32.mrb[17].mxu1 }
 0x55a   : > { %v2707_v53 = vpop.f32.mrb[18].mxu1 }
 0x55b   : > { %v5070_v54 = vpack.i.bf16 %v2375_v47, %v2707_v53  ;;  %v4982_v55 = vpop.f32.mrb[19].mxu1  ;;  %v5596_v47 = vld [vmem:[#allocation2] sm:$0xff] }
 0x55c   : > { %v5464_v55 = vld [vmem:[%s5761_s25] ss:$8 sps:$4 sm:$0xff]  }
 0x55d   : > { %5071 = vrot.lane.b32.xlu1 %v5070_v54, %s5657_s24 }
 0x58b   : > { %v6189_v56 = vpop.f32.mrb[20].mxu1 }
 0x58c   : > { %v4992_v57 = vpop.f32.mrb[21].mxu1 }
 0x58d   : > { %v5469_v57 = vld [vmem:[%s5761_s25 + $0x14] ss:$8 sps:$4 sm:$0xff]  }
 0x590   : > { %v3039_v58 = vpop.f32.mrb[22].mxu1 }
 0x591   : > { %v5002_v35 = vpop.f32.mrb[23].mxu1 }
 0x592   : > { %v5472_v35 = vld [vmem:[%s5761_s25 + $0x24] ss:$8 sps:$4 sm:$0xff]  }
 0x594   : > { %v6191_v59 = vpop.f32.mrb[24].mxu1 }
 0x595   : > { %v5012_v20 = vpop.f32.mrb[25].mxu1 }
 0x596   : > { %v5475_v20 = vld [vmem:[%s5761_s25 + $0x34] ss:$8 sps:$4 sm:$0xff]  }
 0x598   : > { %v3371_v60 = vpop.f32.mrb[26].mxu1 }
 0x599   : > { %v5075_v61 = vpack.i.bf16 %v3039_v58, %v3371_v60  ;;  %v5022_v62 = vpop.f32.mrb[27].mxu1  ;;  %v5467_v58 = vld [vmem:[%s5761_s25 + $0x10] ss:$8 sps:$4 sm:$0xff]  }
 0x59a   : > { %v5473_v60 = vld [vmem:[%s5761_s25 + $0x30] ss:$8 sps:$4 sm:$0xff]   ;;  %v5476_v62 = vld [vmem:[%s5761_s25 + $0x40] ss:$8 sps:$4 sm:$0xff]  }
 0x59b   : > { %5076 = vrot.lane.b32.xlu1 %v5075_v61, %s5657_s24  ;;  %v5478_v61 = vld [vmem:[%s5761_s25 + $0x44] ss:$8 sps:$4 sm:$0xff]  }
 0x5cf   : > { %v5072_v1 = vpop.permute.xlu1 %5071 }
 0x5d0   : > { %v5074_v2 = vunpack.i.h.bf16 %v5072_v1  ;;  %v5073_v3 = vunpack.i.l.bf16 %v5072_v1  ;;  %v5481_v1 = vld [vmem:[%s5761_s25 + $0x54] ss:$8 sps:$4 sm:$0xff]  }
 0x5d2   : > { %v3391_v4 = vsel %vm2045_vm1, %v6153_v12, %v5074_v2  ;;  %v3392_v63 = vsel %vm2045_vm1, %v2538_v51, %v5073_v3  ;;  %v5425_v12 = vld [vmem:[%s5756_s20 + $0x130] ss:$8 sps:$4 sm:$0xff]   ;;  %v5484_v3 = vld [vmem:[%s5761_s25 + $0x64] ss:$8 sps:$4 sm:$0xff]   ;;  %s5658_s20 = smov [#allocation2]  }
 0x5d3   : > { %v3395_v5 = vpack.c.bf16 %v3391_v4, %v3391_v4  ;;  %v3396_v6 = vpack.c.bf16 %v3392_v63, %v3392_v63  ;;  %v5479_v2 = vld [vmem:[%s5761_s25 + $0x50] ss:$8 sps:$4 sm:$0xff]   ;;  %v5482_v4 = vld [vmem:[%s5761_s25 + $0x60] ss:$8 sps:$4 sm:$0xff]   ;;  %v5487_v63 = vld [vmem:[%s5761_s25 + $0x74] ss:$8 sps:$4 sm:$0xff]  }
 0x5d4   : > { %s4382_s15 = sshll.u32 %s5658_s20, 4  ;;  %s4383_s15 = int_to_ptr.vmem [resolvable:$true] %s4382_s15 }
 0x5d5   : > { %3815 = vmatprep.mubr.bf16.mxu0 %v3396_v6  ;;  %v5490_v6 = vld [vmem:[%s5761_s25 + $0x84] ss:$8 sps:$4 sm:$0xff]   ;;  %p5605_p10 = scmp.lt.s32.totalorder %s4383_s15, %s4383_s15 }
 0x5d6   : > { %3816 = vmatmul.mubr.bf16.vlgmr.msra.gmra.mrb[28].mxu0 %v3395_v5  ;;  %v5485_v5 = vld [vmem:[%s5761_s25 + $0x70] ss:$8 sps:$4 sm:$0xff]  }
 0x5d7   : > { %3825 = vmatpush1.bf16.msra.mxu0 %v5416_v7  ;;  %v5488_v7 = vld [vmem:[%s5761_s25 + $0x80] ss:$8 sps:$4 sm:$0xff]  }
 0x5d8   : > { %3826 = vmatprep.subr.bf16.mxu0 %v5421_v8  ;;  %v5493_v8 = vld [vmem:[%s5761_s25 + $0x94] ss:$8 sps:$4 sm:$0xff]  }
 0x5db   : > { %3827 = vmatpush1.bf16.msra.mxu0 %v5419_v9  ;;  %v5491_v9 = vld [vmem:[%s5761_s25 + $0x90] ss:$8 sps:$4 sm:$0xff]  }
 0x5dc   : > { %3828 = vmatprep.subr.bf16.mxu0 %v5424_v10  ;;  %v5496_v10 = vld [vmem:[%s5761_s25 + $0xa4] ss:$8 sps:$4 sm:$0xff]  }
 0x5df   : > { %3829 = vmatpush1.bf16.msra.mxu0 %v5422_v11  ;;  %v5494_v11 = vld [vmem:[%s5761_s25 + $0xa0] ss:$8 sps:$4 sm:$0xff]  }
 0x5e0   : > { %3830 = vmatprep.subr.bf16.mxu0 %v5427_v0 }
 0x5e3   : > { %3831 = vmatpush1.bf16.msra.mxu0 %v5425_v12 }
 0x5e4   : > { %3832 = vmatprep.subr.bf16.mxu0 %v5430_v13 }
 0x5e7   : > { %3833 = vmatpush1.bf16.msra.mxu0 %v5428_v14 }
 0x5e8   : > { %3834 = vmatprep.subr.bf16.mxu0 %v5433_v15 }
 0x5eb   : > { %3835 = vmatpush1.bf16.msra.mxu0 %v5431_v17 }
 0x5ec   : > { %3836 = vmatprep.subr.bf16.mxu0 %v5436_v18 }
 0x5ef   : > { %3837 = vmatpush1.bf16.msra.mxu0 %v5434_v16  ;;  %v5499_v16 = vld [vmem:[%s5761_s25 + $0xb4] ss:$8 sps:$4 sm:$0xff]  }
 0x5f0   : > { %3838 = vmatprep.subr.bf16.mxu0 %v5439_v19  ;;  %v5497_v19 = vld [vmem:[%s5761_s25 + $0xb0] ss:$8 sps:$4 sm:$0xff]  }
 0x5f3   : > { %3839 = vmatpush1.bf16.msra.mxu0 %v5437_v21  ;;  %v5502_v21 = vld [vmem:[%s5761_s25 + $0xc4] ss:$8 sps:$4 sm:$0xff]  }
 0x5f4   : > { %3840 = vmatprep.subr.bf16.mxu0 %v5442_v45  ;;  %v5500_v45 = vld [vmem:[%s5761_s25 + $0xc0] ss:$8 sps:$4 sm:$0xff]  }
 0x5f7   : > { %3841 = vmatpush1.bf16.msra.mxu0 %v5440_v22  ;;  %v5505_v22 = vld [vmem:[%s5761_s25 + $0xd4] ss:$8 sps:$4 sm:$0xff]  }
 0x5f8   : > { %3842 = vmatprep.subr.bf16.mxu0 %v5445_v23  ;;  %v5503_v23 = vld [vmem:[%s5761_s25 + $0xd0] ss:$8 sps:$4 sm:$0xff]  }
 0x5fb   : > { %3843 = vmatpush1.bf16.msra.mxu0 %v5443_v24  ;;  %v5508_v24 = vld [vmem:[%s5761_s25 + $0xe4] ss:$8 sps:$4 sm:$0xff]  }
 0x5fc   : > { %3844 = vmatprep.subr.bf16.mxu0 %v5448_v25  ;;  %v5506_v25 = vld [vmem:[%s5761_s25 + $0xe0] ss:$8 sps:$4 sm:$0xff]  }
 0x5ff   : > { %3845 = vmatpush1.bf16.msra.mxu0 %v5446_v26  ;;  %v5511_v26 = vld [vmem:[%s5761_s25 + $0xf4] ss:$8 sps:$4 sm:$0xff]  }
 0x600   : > { %3846 = vmatprep.subr.bf16.mxu0 %v5451_v27  ;;  %v5509_v27 = vld [vmem:[%s5761_s25 + $0xf0] ss:$8 sps:$4 sm:$0xff]  }
 0x603   : > { %3847 = vmatpush1.bf16.msra.mxu0 %v5449_v28  ;;  %v5514_v28 = vld [vmem:[%s5766_s28 + $0x4] ss:$8 sps:$4 sm:$0xff]  }
 0x604   : > { %3848 = vmatprep.subr.bf16.mxu0 %v5454_v29 }
 0x607   : > { %3849 = vmatpush1.bf16.msra.mxu0 %v5452_v34 }
 0x608   : > { %3850 = vmatprep.subr.bf16.mxu0 %v5457_v30 }
 0x60b   : > { %3851 = vmatpush1.bf16.msra.mxu0 %v5455_v31 }
 0x60c   : > { %3852 = vmatprep.subr.bf16.mxu0 %v5460_v32 }
 0x60d   : > { %v5077_v37 = vpop.permute.xlu1 %5076 }
 0x60e   : > { %v5079_v38 = vunpack.i.h.bf16 %v5077_v37  ;;  %v5078_v39 = vunpack.i.l.bf16 %v5077_v37 }
 0x60f   : > { %3853 = vmatpush1.bf16.msra.mxu0 %v5458_v33 }
 0x610   : > { %3854 = vmatprep.subr.bf16.mxu0 %v5463_v36  ;;  %v3394_v41 = vsel %vm2045_vm1, %v6191_v59, %v5078_v39  ;;  %v3393_v42 = vsel %vm2045_vm1, %v6189_v56, %v5079_v38  ;;  %v5466_v56 = vld [vmem:[%s5761_s25 + $0x4] ss:$8 sps:$4 sm:$0xff]   ;;  %v5470_v59 = vld [vmem:[%s5761_s25 + $0x20] ss:$8 sps:$4 sm:$0xff]   ;;  %v5517_v39 = vld [vmem:[%s5766_s28 + $0x14] ss:$8 sps:$4 sm:$0xff]  }
 0x611   : > { %v3398_v43 = vpack.c.bf16 %v3394_v41, %v3394_v41  ;;  %v3397_v44 = vpack.c.bf16 %v3393_v42, %v3393_v42  ;;  %4076 = vmatprep.subr.bf16.mxu1 %v5466_v56  ;;  %v5512_v38 = vld [vmem:[%s5766_s28] ss:$8 sps:$4 sm:$0xff]   ;;  %v5520_v41 = vld [vmem:[%s5766_s28 + $0x24] ss:$8 sps:$4 sm:$0xff]   ;;  %v5541_v56 = vld [vmem:[%s5766_s28 + $0x94] ss:$8 sps:$4 sm:$0xff]  }
 0x612   : > { %4077 = vmatpush1.bf16.msra.mxu1 %v5464_v55  ;;  %v5518_v42 = vld [vmem:[%s5766_s28 + $0x20] ss:$8 sps:$4 sm:$0xff]   ;;  %s5598_s25 = scalar_lea.vmem %s4383_s15, 256 }
 0x613   : > { %3855 = vmatpush1.bf16.msra.mxu0 %v5461_v40  ;;  %3856 = vmatprep.mubr.bf16.mxu0 %v3398_v43  ;;  %v5515_v40 = vld [vmem:[%s5766_s28 + $0x10] ss:$8 sps:$4 sm:$0xff]   ;;  %v5523_v43 = vld [vmem:[%s5766_s28 + $0x34] ss:$8 sps:$4 sm:$0xff]   ;;  %v5536_v55 = vld [vmem:[%s5766_s28 + $0x80] ss:$8 sps:$4 sm:$0xff]   ;;  %p5599_p7 = scmp.ne.s32.totalorder %s4383_s15, %s5598_s25  ;;  %p5606_p11 = scmp.lt.s32.totalorder %s5598_s25, %s5598_s25 }
 0x614   : > { %4078 = vmatprep.subr.bf16.mxu1 %v5469_v57  ;;  %v5539_v57 = vld [vmem:[%s5766_s28 + $0x90] ss:$8 sps:$4 sm:$0xff]  }
 0x615   : > { %p5600_p8 = pnand %p5599_p7, %p6308_p6  ;;  %p5607_p12 = por %p5606_p11, %p5605_p10 }
 0x616   : > { %3857 = vmatmul.mubr.bf16.vlgmr.msra.gmra.mrb[28].mxu0 %v3397_v44  ;;  %4079 = vmatpush1.bf16.msra.mxu1 %v5467_v58  ;;  %v5521_v44 = vld [vmem:[%s5766_s28 + $0x30] ss:$8 sps:$4 sm:$0xff]   ;;  %v5544_v58 = vld [vmem:[%s5766_s28 + $0xa4] ss:$8 sps:$4 sm:$0xff]  }
 0x617   : > { %4080 = vmatprep.subr.bf16.mxu1 %v5472_v35  ;;  %v5542_v35 = vld [vmem:[%s5766_s28 + $0xa0] ss:$8 sps:$4 sm:$0xff]   ;;  %p5601_p9 = pneg %p5600_p8 }
 0x619   : > { %p5608_p13 = pnand %p5607_p12, %p5601_p9 }
 0x61a   : > { %4081 = vmatpush1.bf16.msra.mxu1 %v5470_v59  ;;  %v5547_v59 = vld [vmem:[%s5766_s28 + $0xb4] ss:$8 sps:$4 sm:$0xff]  }
 0x61b   : > { %4082 = vmatprep.subr.bf16.mxu1 %v5475_v20  ;;  %v5545_v20 = vld [vmem:[%s5766_s28 + $0xb0] ss:$8 sps:$4 sm:$0xff]  }
 0x61e   : > { %4083 = vmatpush1.bf16.msra.mxu1 %v5473_v60  ;;  %v5550_v60 = vld [vmem:[%s5766_s28 + $0xc4] ss:$8 sps:$4 sm:$0xff]  }
 0x61f   : > { %4084 = vmatprep.subr.bf16.mxu1 %v5478_v61  ;;  %v5548_v61 = vld [vmem:[%s5766_s28 + $0xc0] ss:$8 sps:$4 sm:$0xff]  }
 0x622   : > { %4085 = vmatpush1.bf16.msra.mxu1 %v5476_v62  ;;  %v5553_v62 = vld [vmem:[%s5766_s28 + $0xd4] ss:$8 sps:$4 sm:$0xff]  }
 0x623   : > { %4086 = vmatprep.subr.bf16.mxu1 %v5481_v1  ;;  %v5551_v1 = vld [vmem:[%s5766_s28 + $0xd0] ss:$8 sps:$4 sm:$0xff]  }
 0x626   : > { %4087 = vmatpush1.bf16.msra.mxu1 %v5479_v2  ;;  %v5556_v2 = vld [vmem:[%s5766_s28 + $0xe4] ss:$8 sps:$4 sm:$0xff]  }
 0x627   : > { %4088 = vmatprep.subr.bf16.mxu1 %v5484_v3  ;;  %v5554_v3 = vld [vmem:[%s5766_s28 + $0xe0] ss:$8 sps:$4 sm:$0xff]  }
 0x62a   : > { %4089 = vmatpush1.bf16.msra.mxu1 %v5482_v4  ;;  %v5559_v4 = vld [vmem:[%s5766_s28 + $0xf4] ss:$8 sps:$4 sm:$0xff]  }
 0x62b   : > { %4090 = vmatprep.subr.bf16.mxu1 %v5487_v63  ;;  %v5557_v63 = vld [vmem:[%s5766_s28 + $0xf0] ss:$8 sps:$4 sm:$0xff]  }
 0x62e   : > { %4091 = vmatpush1.bf16.msra.mxu1 %v5485_v5 }
 0x62f   : > { %4092 = vmatprep.subr.bf16.mxu1 %v5490_v6 }
 0x632   : > { %4093 = vmatpush1.bf16.msra.mxu1 %v5488_v7 }
 0x633   : > { %4094 = vmatprep.subr.bf16.mxu1 %v5493_v8 }
 0x636   : > { %4095 = vmatpush1.bf16.msra.mxu1 %v5491_v9 }
 0x637   : > { %4096 = vmatprep.subr.bf16.mxu1 %v5496_v10 }
 0x63a   : > { %4097 = vmatpush1.bf16.msra.mxu1 %v5494_v11 }
 0x63b   : > { %4098 = vmatprep.subr.bf16.mxu1 %v5499_v16 }
 0x63e   : > { %4099 = vmatpush1.bf16.msra.mxu1 %v5497_v19 }
 0x63f   : > { %4100 = vmatprep.subr.bf16.mxu1 %v5502_v21 }
 0x642   : > { %4101 = vmatpush1.bf16.msra.mxu1 %v5500_v45 }
 0x643   : > { %4102 = vmatprep.subr.bf16.mxu1 %v5505_v22 }
 0x646   : > { %4103 = vmatpush1.bf16.msra.mxu1 %v5503_v23 }
 0x647   : > { %4104 = vmatprep.subr.bf16.mxu1 %v5508_v24 }
 0x64a   : > { %4105 = vmatpush1.bf16.msra.mxu1 %v5506_v25 }
 0x64b   : > { %4106 = vmatprep.subr.bf16.mxu1 %v5511_v26 }
 0x64e   : > { %4107 = vmatpush1.bf16.msra.mxu1 %v5509_v27 }
 0x64f   : > { %4313 = vmatprep.subr.bf16.mxu1 %v5514_v28 }
 0x6e9   : > { %v3858_v46 = vpop.f32.mrb[28].mxu0 }
 0x6ea   : > { %v5023_v48 = vadd.f32 %v5596_v47, %v3858_v46  ;;  %v3860_v49 = vpop.f32.mrb[29].mxu0  ;;  %v5526_v46 = vld [vmem:[%s5766_s28 + $0x44] ss:$8 sps:$4 sm:$0xff]   ;;  %v5524_v47 = vld [vmem:[%s5766_s28 + $0x40] ss:$8 sps:$4 sm:$0xff]  }
 0x6eb   : > { %v5024_v51 = vadd.f32 %v5597_v50, %v3860_v49  ;;  %v3862_v52 = vpop.f32.mrb[30].mxu0  ;;  %v5527_v49 = vld [vmem:[%s5766_s28 + $0x50] ss:$8 sps:$4 sm:$0xff]   ;;  %v5532_v50 = vld [vmem:[%s5766_s28 + $0x64] ss:$8 sps:$4 sm:$0xff]  }
 0x6ec   : > { %v3863_v53 = vpop.f32.mrb[31].mxu0  ;;  %v5535_v52 = vld [vmem:[%s5766_s28 + $0x74] ss:$8 sps:$4 sm:$0xff]  }
 0x6ed   : > { %v3865_v54 = vadd.f32 %v5024_v51, %v5023_v48  ;;  %v5533_v53 = vld [vmem:[%s5766_s28 + $0x70] ss:$8 sps:$4 sm:$0xff]  }
 0x6ef   : > { %3866 = vadd.xlane.f32.xlu0 %v3865_v54  ;;  %v5538_v54 = vld [vmem:[%s5766_s28 + $0x84] ss:$8 sps:$4 sm:$0xff]  }
 0x77c   : > { %v3867_v0 = vpop.xlane.xlu0 %3866 }
 0x77d   : > { %v3869_v12 = vmul.f32 0.00390625, %v3867_v0 }
 0x77f   : > { %v3870_v13 = vsub.f32 %v5023_v48, %v3869_v12  ;;  %v3871_v14 = vsub.f32 %v5024_v51, %v3869_v12  ;;  %v5529_v48 = vld [vmem:[%s5766_s28 + $0x54] ss:$8 sps:$4 sm:$0xff]   ;;  %v5530_v51 = vld [vmem:[%s5766_s28 + $0x60] ss:$8 sps:$4 sm:$0xff]  }
 0x781   : > { %v3872_v15 = vmul.f32 %v3870_v13, %v3870_v13  ;;  %v3873_v17 = vmul.f32 %v3871_v14, %v3871_v14 }
 0x783   : > { %v3874_v18 = vadd.f32 %v3873_v17, %v3872_v15 }
 0x785   : > { %3875 = vadd.xlane.f32.xlu1 %v3874_v18 }
 0x812   : > { %v3876_v29 = vpop.xlane.xlu1 %3875 }
 0x813   : > { %v3877_v34 = vmul.f32 0.00390625, %v3876_v29 }
 0x815   : > { %v3878_v30 = vadd.f32 1e-05, %v3877_v34 }
 0x817   : > { %5592 = vrsqrt.f32 %v3878_v30 }
 0x821   : > { %v5593_v31 = vpop.eup %5592 }
 0x822   : > { %v6265_v32 = vmul.f32 %v5593_v31, %v3871_v14  ;;  %v6267_v33 = vmul.f32 %v5593_v31, %v3870_v13 }
 0x824   : > { %v3883_v36 = vpack.c.bf16 %v6265_v32, %v6265_v32  ;;  %v3882_v37 = vpack.c.bf16 %v6267_v33, %v6267_v33 }
 0x826   : > { %4108 = vmatprep.mubr.bf16.mxu1 %v3883_v36 }
 0x827   : > { %4109 = vmatmul.mubr.bf16.vlgmr.msra.gmra.mrb[28].mxu1 %v3882_v37 }
 0x828   : > { %4314 = vmatpush1.bf16.msra.mxu1 %v5512_v38 }
 0x829   : > { %4315 = vmatprep.subr.bf16.mxu1 %v5517_v39 }
 0x82c   : > { %4316 = vmatpush1.bf16.msra.mxu1 %v5515_v40 }
 0x82d   : > { %4317 = vmatprep.subr.bf16.mxu1 %v5520_v41 }
 0x830   : > { %4318 = vmatpush1.bf16.msra.mxu1 %v5518_v42 }
 0x831   : > { %4319 = vmatprep.subr.bf16.mxu1 %v5523_v43 }
 0x834   : > { %4320 = vmatpush1.bf16.msra.mxu1 %v5521_v44 }
 0x835   : > { %4321 = vmatprep.subr.bf16.mxu1 %v5526_v46 }
 0x838   : > { %4322 = vmatpush1.bf16.msra.mxu1 %v5524_v47 }
 0x839   : > { %4323 = vmatprep.subr.bf16.mxu1 %v5529_v48 }
 0x83c   : > { %4324 = vmatpush1.bf16.msra.mxu1 %v5527_v49 }
 0x83d   : > { %4325 = vmatprep.subr.bf16.mxu1 %v5532_v50 }
 0x840   : > { %4326 = vmatpush1.bf16.msra.mxu1 %v5530_v51 }
 0x841   : > { %4327 = vmatprep.subr.bf16.mxu1 %v5535_v52 }
 0x844   : > { %4328 = vmatpush1.bf16.msra.mxu1 %v5533_v53 }
 0x845   : > { %4329 = vmatprep.subr.bf16.mxu1 %v5538_v54 }
 0x848   : > { %4330 = vmatpush1.bf16.msra.mxu1 %v5536_v55 }
 0x849   : > { %4331 = vmatprep.subr.bf16.mxu1 %v5541_v56 }
 0x84c   : > { %4332 = vmatpush1.bf16.msra.mxu1 %v5539_v57 }
 0x84d   : > { %4333 = vmatprep.subr.bf16.mxu1 %v5544_v58 }
 0x850   : > { %4334 = vmatpush1.bf16.msra.mxu1 %v5542_v35 }
 0x851   : > { %4335 = vmatprep.subr.bf16.mxu1 %v5547_v59 }
 0x854   : > { %4336 = vmatpush1.bf16.msra.mxu1 %v5545_v20 }
 0x855   : > { %4337 = vmatprep.subr.bf16.mxu1 %v5550_v60 }
 0x858   : > { %4338 = vmatpush1.bf16.msra.mxu1 %v5548_v61 }
 0x859   : > { %4339 = vmatprep.subr.bf16.mxu1 %v5553_v62 }
 0x85c   : > { %4340 = vmatpush1.bf16.msra.mxu1 %v5551_v1 }
 0x85d   : > { %4341 = vmatprep.subr.bf16.mxu1 %v5556_v2 }
 0x860   : > { %4342 = vmatpush1.bf16.msra.mxu1 %v5554_v3 }
 0x861   : > { %4343 = vmatprep.subr.bf16.mxu1 %v5559_v4 }
 0x864   : > { %4344 = vmatpush1.bf16.msra.mxu1 %v5557_v63 }
 0x8fa   : > { %v4110_v5 = vpop.f32.mrb[28].mxu1 }
 0x8fb   : > { %v4117_v6 = vmax.f32 %v4110_v5, 0.0  ;;  %v4112_v7 = vpop.f32.mrb[29].mxu1 }
 0x8fc   : > { %v4118_v8 = vmax.f32 %v4112_v7, 0.0  ;;  %v4114_v9 = vpop.f32.mrb[30].mxu1 }
 0x8fd   : > { %v4115_v10 = vpop.f32.mrb[31].mxu1  ;;  %v4119_v0 = vpack.c.bf16 %v4117_v6, %v4117_v6 }
 0x8fe   : > { %v4120_v11 = vpack.c.bf16 %v4118_v8, %v4118_v8 }
 0x900   : > { %4345 = vmatprep.mubr.bf16.mxu1 %v4120_v11 }
 0x901   : > { %4346 = vmatmul.mubr.bf16.vlgmr.msra.gmra.mrb[32].mxu1 %v4119_v0 }
 0x9d4   : > { %v4347_v12 = vpop.f32.mrb[32].mxu1 }
 0x9d5   : > { %v4348_v13 = vadd.f32 %v4347_v12, %v6267_v33  ;;  %v4349_v14 = vpop.f32.mrb[33].mxu1 }
 0x9d6   : > { %v4350_v15 = vadd.f32 %v4349_v14, %v6265_v32  ;;  %v4351_v17 = vpop.f32.mrb[34].mxu1 }
 0x9d7   : > { %v4352_v18 = vpop.f32.mrb[35].mxu1 }
 0x9d8   : > { %v4354_v16 = vadd.f32 %v4350_v15, %v4348_v13 }
 0x9da   : > { %4355 = vadd.xlane.f32.xlu0 %v4354_v16 }
 0xa67   : > { %v4356_v19 = vpop.xlane.xlu0 %4355 }
 0xa68   : > { %v4357_v21 = vmul.f32 0.00390625, %v4356_v19 }
 0xa6a   : > { %v4358_v45 = vsub.f32 %v4348_v13, %v4357_v21  ;;  %v4359_v22 = vsub.f32 %v4350_v15, %v4357_v21 }
 0xa6c   : > { %v4360_v23 = vmul.f32 %v4358_v45, %v4358_v45  ;;  %v4361_v24 = vmul.f32 %v4359_v22, %v4359_v22 }
 0xa6e   : > { %v4362_v25 = vadd.f32 %v4361_v24, %v4360_v23 }
 0xa70   : > { %4363 = vadd.xlane.f32.xlu0 %v4362_v25 }
 0xafd   : > { %v4364_v26 = vpop.xlane.xlu0 %4363 }
 0xafe   : > { %v4365_v27 = vmul.f32 0.00390625, %v4364_v26 }
 0xb00   : > { %v4366_v28 = vadd.f32 1e-05, %v4365_v27 }
 0xb02   : > { %5594 = vrsqrt.f32 %v4366_v28 }
 0xb0c   : > { %v5595_v29 = vpop.eup %5594 }
 0xb0d   : > { %v4368_v34 = vmul.f32 %v5595_v29, %v4358_v45  ;;  %v4369_v30 = vmul.f32 %v5595_v29, %v4359_v22 }
 0xb0f   : > { %4370 = vst [vmem:[#allocation2] sm:$0xff] %v4368_v34  ;;  %4371 = vst [vmem:[#allocation2 + $0x8] sm:$0xff] %v4369_v30 }
 0xb10   : > { %5611 = shalt.err (!%p5608_p13)
}
 0xb11   : > { %s5612_s29 = scalar_lea.hbm %s6354_s11, 256 }
 0xb12   : > { %p5613_p0 = scmp.ne.s32.totalorder %s6354_s11, %s5612_s29  ;;  %p5618_p3 = scmp.lt.u32.totalorder %s5612_s29, %s6354_s11 }
 0xb14   : > { %p5614_p1 = pnand %p5613_p0, %p6308_p6 }
 0xb16   : > { %p5615_p2 = pneg %p5614_p1 }
 0xb18   : > { %p5620_p4 = pnand %p5618_p3, %p5615_p2 }
 0xb1a   : > { %5623 = shalt.err (!%p5620_p4)
}
 0xb1b   : > { %5030 = dma.vmem_to_hbm [thread:$0]  (%p6308_p6), %s4383_s15, 256, %s6354_s11, [#allocation3]  }
 0xb1c   : > { %5637 = dma.done.wait (%p6308_p6), [#allocation3], 256  }
 0xb1d   : > { %5639 = vsyncadd (%p6308_p6), [#allocation3], 4294967040 }
 0xb1e PF: > { %s22_s19 = sadd.s32 1, %s5650_s19   ;;  %s6360_s27 = sld [smem:[#allocation5_spill]] }
 0xb1f   : > { %p19_p5 = scmp.ge.s32.totalorder %s22_s19, 8   ;;  %s6361_s17 = smov %s5646_s18 }
 0xb21   :  { %21 = sbr.rel (!%p19_p5) target bundleno = 4 (0x4), region = 120 }
 0xb24   : > { %s6362_s18 = smov %s6360_s27 }
 0xb28   :  { %4395 = vsyncpa [#allocation3], 1 }
 0xb29   :  { %4397 = vsyncpa [#allocation3 + $0x1], 1 }

</bundles_post_ra>
